<compile_context>
chip_gen: v6e
topology: v6e:2x2x1
jax: 0.10.0
libtpu: 0.0.40
codegen_flags: <defaults>
</compile_context>

<pallas_src>
import jax
import jax.numpy as jnp
import numpy as np
from jax.experimental import pallas as pl
from jax.experimental.pallas import tpu as pltpu

SELU_ALPHA = 1.6732632423543772848170429916717
SELU_SCALE = 1.0507009873554804934193349852946
LANES = 128


def _selu(x):
    return SELU_SCALE * jnp.where(x > 0, x, SELU_ALPHA * (jnp.exp(x) - 1.0))


def _reflect(i, n):
    """ReflectionPad2d index (no edge repeat)."""
    if i < 0:
        return -i
    if i > n - 1:
        return 2 * (n - 1) - i
    return i


def _roll_read_lane(a, off):
    """b[:, l] = a[:, (l + off) % L]  (XLU lane rotation; off is a Python int)."""
    s = (-off) % a.shape[-1]
    return a if s == 0 else pltpu.roll(a, s, axis=1)


def _roll_read_row(a, off):
    """b[h, :] = a[(h + off) % H, :]  (XLU sublane rotation)."""
    s = (-off) % a.shape[0]
    return a if s == 0 else pltpu.roll(a, s, axis=0)


def _build_masks(H, W, K, shape):
    """Hoisted boundary masks for reflection + lane iota (computed once)."""
    p = K // 2
    row = jax.lax.broadcasted_iota(jnp.int32, shape, 0)
    lane = jax.lax.broadcasted_iota(jnp.int32, shape, 1)
    cols = sorted(set(range(p)) | set(range(W - p, W)))
    rows = sorted(set(range(p)) | set(range(H - p, H)))
    if W & (W - 1) == 0:                      # power-of-two W: cheap in-plane col index
        wpos = jnp.bitwise_and(lane, W - 1)
        col_eq = {c: wpos == c for c in cols}
    else:                                     # general W: OR of per-plane compares (hoisted)
        nplanes = shape[1] // W
        def col_mask(c):
            m = lane == c
            for q in range(1, nplanes):
                m = jnp.logical_or(m, lane == q * W + c)
            return m
        col_eq = {c: col_mask(c) for c in cols}
    row_eq = {r: row == r for r in rows}
    return lane, col_eq, row_eq


def _wshift(stack, d, W, col_eq):
    """win[h, p*W + c] = stack[h, p*W + reflect(c + d)] for every W-wide plane.

    Interior: one lane roll (garbage that wraps across a plane boundary lands only
    at columns that are reflection-masked).  Boundary: one select per OOB column
    against another lane roll (the reflected source stays inside the plane)."""
    if d == 0:
        return stack
    out = _roll_read_lane(stack, d)
    oob = range(0, -d) if d < 0 else range(W - d, W)
    for c in oob:
        off = _reflect(c + d, W) - c
        out = jnp.where(col_eq[c], _roll_read_lane(stack, off), out)
    return out


def _hshift(stack, d, H, row_eq):
    """Same as _wshift but along the sublane (H) axis; planes share H, so no
    cross-plane issue at all."""
    if d == 0:
        return stack
    out = _roll_read_row(stack, d)
    oob = range(0, -d) if d < 0 else range(H - d, H)
    for r in oob:
        off = _reflect(r + d, H) - r
        out = jnp.where(row_eq[r], _roll_read_row(stack, off), out)
    return out


def _conv_stage(stack, wl_ref, n_out, K, H, W, col_eq, row_eq):
    """KxK 'same' reflection conv taps on a channel-major lane slab.

    stack : (H, LANES) activated planes, lane = ci*group + n*W + w.
    wl_ref: (n_out*K*K, LANES) per-lane weights (VMEM), row = (co*K+kh)*K+kw.
    Returns n_out accumulators (per-lane products summed over the K*K taps;
    the cross-channel lane reduction is applied by the caller)."""
    p = K // 2
    colvars = [_wshift(stack, kw - p, W, col_eq) for kw in range(K)]
    accs = [None] * n_out
    for kh in range(K):
        for kw in range(K):
            win = _hshift(colvars[kw], kh - p, H, row_eq)
            for co in range(n_out):
                wrow = wl_ref[pl.ds((co * K + kh) * K + kw, 1), :]   # (1, LANES)
                t = win * wrow
                accs[co] = t if accs[co] is None else accs[co] + t
    return accs


def _reduce_groups(acc, ngroups, group):
    """out[:, l] = sum_g acc[:, l + g*group]   (valid for l < group)."""
    red = acc
    for g in range(1, ngroups):
        red = red + _roll_read_lane(acc, g * group)
    return red


def _make_fused_kernel(cin, midc, cout, K, H, W, NB, res_scale, skip):
    group = NB * W                               # lanes per channel group

    def kernel(x_ref, w1_ref, b1_ref, w2_ref, b2_ref, o_ref):
        lane, col_eq, row_eq = _build_masks(H, W, K, (H, LANES))
        xs_raw = x_ref[0].astype(jnp.float32)    # (H, LANES) lane-dense input slab

        # ---- stage 1: SELU -> conv1 (+b1), all cin*NB planes in one slab ----
        a1 = _selu(xs_raw)
        acc1 = _conv_stage(a1, w1_ref, midc, K, H, W, col_eq, row_eq)
        red1 = [_reduce_groups(acc1[m], cin, group) + b1_ref[m] for m in range(midc)]

        # ---- repack mid activations into a channel-major slab (junk lanes zeroed) ----
        s2 = red1[0]
        for m in range(1, midc):
            gmask = jnp.logical_and(lane >= m * group, lane < (m + 1) * group)
            s2 = jnp.where(gmask, _roll_read_lane(red1[m], -m * group), s2)
        s2 = jnp.where(lane < midc * group, s2, 0.0)

        # ---- stage 2: SELU -> conv2 (+b2) ----
        a2 = _selu(s2)
        acc2 = _conv_stage(a2, w2_ref, cout, K, H, W, col_eq, row_eq)
        red2 = [_reduce_groups(acc2[co], midc, group) + b2_ref[co] for co in range(cout)]

        # ---- assemble lane-dense output slab (+ residual) ----
        out = red2[0]
        for co in range(1, cout):
            gmask = jnp.logical_and(lane >= co * group, lane < (co + 1) * group)
            out = jnp.where(gmask, _roll_read_lane(red2[co], -co * group), out)
        if skip:
            out = res_scale * out + xs_raw       # same lane layout when cin == cout
        o_ref[0] = out.astype(o_ref.dtype)       # full-lane unmasked store

    return kernel


def res_3x3_block2(x, w1, b1, w2, b2, res_scale=0.25):
    """RES_3x3_BLOCK2.forward. x:(N,Cin,H,W), w1:(Cmid,Cin,K,K), w2:(Cout,Cmid,K,K)."""
    N, cin, H, W = x.shape
    midc, cin_w, K, _ = w1.shape
    cout = w2.shape[0]
    assert cin_w == cin and w2.shape[1] == midc
    skip = cin == cout                           # same condition as the PyTorch module
    p = K // 2
    maxc = max(cin, midc, cout)

    if K % 2 == 0 or H <= p or W <= p or maxc * W > LANES:
        # TODO(synk): shapes needing a channel-split grid / im2col-MXU path are not handled here.
        raise NotImplementedError("res_3x3_block2 pallas kernel: unsupported shape")

    # images per grid step: as many as fit in 128 lanes (full lane density).
    NB = 1
    for nb in range(N, 0, -1):
        if N % nb == 0 and maxc * nb * W <= LANES:
            NB = nb
            break
    G = N // NB
    group = NB * W

    # ---- wrapper-side layout plumbing (lane-dense slabs; tiny, outside kernel) ----
    xs = jnp.transpose(x.reshape(G, NB, cin, H, W), (0, 3, 2, 1, 4)).reshape(G, H, cin * group)
    if cin * group < LANES:
        xs = jnp.pad(xs, ((0, 0), (0, 0), (0, LANES - cin * group)))

    def _lane_weights(w, n_in, n_out):
        wt = jnp.transpose(w, (0, 2, 3, 1)).astype(jnp.float32)     # (n_out, K, K, n_in)
        wt = jnp.repeat(wt, group, axis=-1)                          # lane l -> ci = l // group
        if n_in * group < LANES:
            wt = jnp.pad(wt, ((0, 0), (0, 0), (0, 0), (0, LANES - n_in * group)))
        return wt.reshape(n_out * K * K, LANES)

    w1l = _lane_weights(w1, cin, midc)
    w2l = _lane_weights(w2, midc, cout)

    kernel = _make_fused_kernel(cin, midc, cout, K, H, W, NB,
                                res_scale if skip else None, skip)

    out_s = pl.pallas_call(
        kernel,
        out_shape=jax.ShapeDtypeStruct((G, H, LANES), x.dtype),
        grid=(G,),                                                   # 1 step at the test shape
        in_specs=[
            pl.BlockSpec((1, H, LANES), lambda g: (g, 0, 0)),        # lane-dense input slab
            pl.BlockSpec((midc * K * K, LANES), lambda g: (0, 0)),   # per-lane conv1 weights
            pl.BlockSpec(memory_space=pltpu.MemorySpace.SMEM),       # b1 scalars
            pl.BlockSpec((cout * K * K, LANES), lambda g: (0, 0)),   # per-lane conv2 weights
            pl.BlockSpec(memory_space=pltpu.MemorySpace.SMEM),       # b2 scalars
        ],
        out_specs=pl.BlockSpec((1, H, LANES), lambda g: (g, 0, 0)),
        compiler_params=pltpu.CompilerParams(dimension_semantics=("parallel",)),
    )(xs, w1l, b1.astype(jnp.float32), w2l, b2.astype(jnp.float32))

    out = out_s[..., : cout * group].reshape(G, H, cout, NB, W)
    return jnp.transpose(out, (0, 3, 2, 1, 4)).reshape(N, cout, H, W)


# ------------------------- pure-JAX reference ------------------------------ #
def _ref_selu_conv(x, w, b):
    p = w.shape[-1] // 2
    xs = jax.nn.selu(x)
    xp = jnp.pad(xs, ((0, 0), (0, 0), (p, p), (p, p)), mode="reflect")
    y = jax.lax.conv_general_dilated(
        xp, w, window_strides=(1, 1), padding="VALID",
        dimension_numbers=("NCHW", "OIHW", "NCHW"))
    return y + b[None, :, None, None]


def _ref_block(x, w1, b1, w2, b2, res_scale=0.25):
    out = _ref_selu_conv(_ref_selu_conv(x, w1, b1), w2, b2)
    if x.shape[1] == w2.shape[0]:
        out = res_scale * out + x
    return out


if __name__ == "__main__":
    # RES_3x3_BLOCK2(in_ch=4, out_ch=4, ker=3, squeeze=2, res_scale=0.25)
    in_ch, out_ch, ker, squeeze, rs = 4, 4, 3, 2, 0.25
    mid_ch = out_ch // squeeze
    N, H, W = 2, 16, 16

    key = jax.random.PRNGKey(0)
    k_x, k_w1, k_b1, k_w2, k_b2 = jax.random.split(key, 5)
    x = jax.random.normal(k_x, (N, in_ch, H, W), jnp.float32)
    w1 = 0.1 * jax.random.normal(k_w1, (mid_ch, in_ch, ker, ker), jnp.float32)
    b1 = 0.1 * jax.random.normal(k_b1, (mid_ch,), jnp.float32)
    w2 = 0.1 * jax.random.normal(k_w2, (out_ch, mid_ch, ker, ker), jnp.float32)
    b2 = 0.1 * jax.random.normal(k_b2, (out_ch,), jnp.float32)

    out = jax.block_until_ready(res_3x3_block2(x, w1, b1, w2, b2, res_scale=rs))
    ref = jax.block_until_ready(_ref_block(x, w1, b1, w2, b2, res_scale=rs))
    if not np.allclose(np.asarray(out), np.asarray(ref), rtol=1e-3, atol=1e-3):
        raise AssertionError("Pallas kernel does not match reference")

    print("KERNEL_OK")
</pallas_src>

<mosaic_0001>
module attributes {stable_mosaic.version = 11 : i64} {
  func.func @kernel(%arg0: i32, %arg1: memref<1x16x128xf32, #tpu.memory_space<vmem>>, %arg2: memref<18x128xf32, #tpu.memory_space<vmem>>, %arg3: memref<2xf32, #tpu.memory_space<smem>>, %arg4: memref<36x128xf32, #tpu.memory_space<vmem>>, %arg5: memref<4xf32, #tpu.memory_space<smem>>, %arg6: memref<1x16x128xf32, #tpu.memory_space<vmem>>) attributes {dimension_semantics = [#tpu.dimension_semantics<parallel>], iteration_bounds = array<i64: 1>, scalar_prefetch = 0 : i64, scratch_operands = 0 : i64, tpu.core_type = #tpu.core_type<tc>, window_params = [{transform_indices = @transform_0, window_bounds = array<i64: 1, 16, 128>}, {pipeline_mode = #tpu.pipeline_mode<synchronous>, transform_indices = @transform_1, window_bounds = array<i64: 18, 128>}, {transform_indices = @transform_2, window_bounds = array<i64: 2>}, {pipeline_mode = #tpu.pipeline_mode<synchronous>, transform_indices = @transform_3, window_bounds = array<i64: 36, 128>}, {transform_indices = @transform_4, window_bounds = array<i64: 4>}, {transform_indices = @transform_5, window_bounds = array<i64: 1, 16, 128>}]} {
    %0 = tpu.iota {dimensions = array<i32: 0>} : vector<16x128xi32>
    %1 = tpu.iota {dimensions = array<i32: 1>} : vector<16x128xi32>
    %c15_i32 = arith.constant 15 : i32
    %2 = vector.broadcast %c15_i32 : i32 to vector<16x128xi32>
    %3 = arith.andi %1, %2 : vector<16x128xi32>
    %c0_i32 = arith.constant 0 : i32
    %4 = vector.broadcast %c0_i32 : i32 to vector<16x128xi32>
    %5 = arith.cmpi eq, %3, %4 : vector<16x128xi32>
    %c15_i32_0 = arith.constant 15 : i32
    %6 = vector.broadcast %c15_i32_0 : i32 to vector<16x128xi32>
    %7 = arith.cmpi eq, %3, %6 : vector<16x128xi32>
    %c0_i32_1 = arith.constant 0 : i32
    %8 = vector.broadcast %c0_i32_1 : i32 to vector<16x128xi32>
    %9 = arith.cmpi eq, %0, %8 : vector<16x128xi32>
    %c15_i32_2 = arith.constant 15 : i32
    %10 = vector.broadcast %c15_i32_2 : i32 to vector<16x128xi32>
    %11 = arith.cmpi eq, %0, %10 : vector<16x128xi32>
    %c0 = arith.constant 0 : index
    %c0_3 = arith.constant 0 : index
    %c0_4 = arith.constant 0 : index
    %12 = vector.load %arg1[%c0, %c0_3, %c0_4] : memref<1x16x128xf32, #tpu.memory_space<vmem>>, vector<1x16x128xf32>
    %13 = vector.shape_cast %12 : vector<1x16x128xf32> to vector<16x128xf32>
    %cst = arith.constant 0.000000e+00 : f32
    %14 = vector.broadcast %cst : f32 to vector<16x128xf32>
    %15 = arith.cmpf ogt, %13, %14 : vector<16x128xf32>
    %16 = math.exp %13 : vector<16x128xf32>
    %cst_5 = arith.constant 1.000000e+00 : f32
    %17 = vector.broadcast %cst_5 : f32 to vector<16x128xf32>
    %18 = arith.subf %16, %17 : vector<16x128xf32>
    %cst_6 = arith.constant 1.67326319 : f32
    %19 = vector.broadcast %cst_6 : f32 to vector<16x128xf32>
    %20 = arith.mulf %19, %18 : vector<16x128xf32>
    %21 = arith.select %15, %13, %20 : vector<16x128xi1>, vector<16x128xf32>
    %cst_7 = arith.constant 1.05070102 : f32
    %22 = vector.broadcast %cst_7 : f32 to vector<16x128xf32>
    %23 = arith.mulf %22, %21 : vector<16x128xf32>
    %c1_i32 = arith.constant 1 : i32
    %24 = tpu.dynamic_rotate %23 by %c1_i32 dim 1 : vector<16x128xf32>, i32 -> vector<16x128xf32>
    %c127_i32 = arith.constant 127 : i32
    %25 = tpu.dynamic_rotate %23 by %c127_i32 dim 1 : vector<16x128xf32>, i32 -> vector<16x128xf32>
    %26 = arith.select %5, %25, %24 : vector<16x128xi1>, vector<16x128xf32>
    %c127_i32_8 = arith.constant 127 : i32
    %27 = tpu.dynamic_rotate %23 by %c127_i32_8 dim 1 : vector<16x128xf32>, i32 -> vector<16x128xf32>
    %c1_i32_9 = arith.constant 1 : i32
    %28 = tpu.dynamic_rotate %23 by %c1_i32_9 dim 1 : vector<16x128xf32>, i32 -> vector<16x128xf32>
    %29 = arith.select %7, %28, %27 : vector<16x128xi1>, vector<16x128xf32>
    %c1_i32_10 = arith.constant 1 : i32
    %30 = tpu.dynamic_rotate %26 by %c1_i32_10 dim 0 : vector<16x128xf32>, i32 -> vector<16x128xf32>
    %c15_i32_11 = arith.constant 15 : i32
    %31 = tpu.dynamic_rotate %26 by %c15_i32_11 dim 0 : vector<16x128xf32>, i32 -> vector<16x128xf32>
    %32 = arith.select %9, %31, %30 : vector<16x128xi1>, vector<16x128xf32>
    %c0_12 = arith.constant 0 : index
    %c0_13 = arith.constant 0 : index
    %33 = vector.load %arg2[%c0_12, %c0_13] : memref<18x128xf32, #tpu.memory_space<vmem>>, vector<1x128xf32>
    %34 = vector.broadcast %33 : vector<1x128xf32> to vector<16x128xf32>
    %35 = arith.mulf %32, %34 : vector<16x128xf32>
    %c9 = arith.constant 9 : index
    %c0_14 = arith.constant 0 : index
    %36 = vector.load %arg2[%c9, %c0_14] : memref<18x128xf32, #tpu.memory_space<vmem>>, vector<1x128xf32>
    %37 = vector.broadcast %36 : vector<1x128xf32> to vector<16x128xf32>
    %38 = arith.mulf %32, %37 : vector<16x128xf32>
    %c1_i32_15 = arith.constant 1 : i32
    %39 = tpu.dynamic_rotate %23 by %c1_i32_15 dim 0 : vector<16x128xf32>, i32 -> vector<16x128xf32>
    %c15_i32_16 = arith.constant 15 : i32
    %40 = tpu.dynamic_rotate %23 by %c15_i32_16 dim 0 : vector<16x128xf32>, i32 -> vector<16x128xf32>
    %41 = arith.select %9, %40, %39 : vector<16x128xi1>, vector<16x128xf32>
    %c1 = arith.constant 1 : index
    %c0_17 = arith.constant 0 : index
    %42 = vector.load %arg2[%c1, %c0_17] : memref<18x128xf32, #tpu.memory_space<vmem>>, vector<1x128xf32>
    %43 = vector.broadcast %42 : vector<1x128xf32> to vector<16x128xf32>
    %44 = arith.mulf %41, %43 : vector<16x128xf32>
    %45 = arith.addf %35, %44 : vector<16x128xf32>
    %c10 = arith.constant 10 : index
    %c0_18 = arith.constant 0 : index
    %46 = vector.load %arg2[%c10, %c0_18] : memref<18x128xf32, #tpu.memory_space<vmem>>, vector<1x128xf32>
    %47 = vector.broadcast %46 : vector<1x128xf32> to vector<16x128xf32>
    %48 = arith.mulf %41, %47 : vector<16x128xf32>
    %49 = arith.addf %38, %48 : vector<16x128xf32>
    %c1_i32_19 = arith.constant 1 : i32
    %50 = tpu.dynamic_rotate %29 by %c1_i32_19 dim 0 : vector<16x128xf32>, i32 -> vector<16x128xf32>
    %c15_i32_20 = arith.constant 15 : i32
    %51 = tpu.dynamic_rotate %29 by %c15_i32_20 dim 0 : vector<16x128xf32>, i32 -> vector<16x128xf32>
    %52 = arith.select %9, %51, %50 : vector<16x128xi1>, vector<16x128xf32>
    %c2 = arith.constant 2 : index
    %c0_21 = arith.constant 0 : index
    %53 = vector.load %arg2[%c2, %c0_21] : memref<18x128xf32, #tpu.memory_space<vmem>>, vector<1x128xf32>
    %54 = vector.broadcast %53 : vector<1x128xf32> to vector<16x128xf32>
    %55 = arith.mulf %52, %54 : vector<16x128xf32>
    %56 = arith.addf %45, %55 : vector<16x128xf32>
    %c11 = arith.constant 11 : index
    %c0_22 = arith.constant 0 : index
    %57 = vector.load %arg2[%c11, %c0_22] : memref<18x128xf32, #tpu.memory_space<vmem>>, vector<1x128xf32>
    %58 = vector.broadcast %57 : vector<1x128xf32> to vector<16x128xf32>
    %59 = arith.mulf %52, %58 : vector<16x128xf32>
    %60 = arith.addf %49, %59 : vector<16x128xf32>
    %c3 = arith.constant 3 : index
    %c0_23 = arith.constant 0 : index
    %61 = vector.load %arg2[%c3, %c0_23] : memref<18x128xf32, #tpu.memory_space<vmem>>, vector<1x128xf32>
    %62 = vector.broadcast %61 : vector<1x128xf32> to vector<16x128xf32>
    %63 = arith.mulf %26, %62 : vector<16x128xf32>
    %64 = arith.addf %56, %63 : vector<16x128xf32>
    %c12 = arith.constant 12 : index
    %c0_24 = arith.constant 0 : index
    %65 = vector.load %arg2[%c12, %c0_24] : memref<18x128xf32, #tpu.memory_space<vmem>>, vector<1x128xf32>
    %66 = vector.broadcast %65 : vector<1x128xf32> to vector<16x128xf32>
    %67 = arith.mulf %26, %66 : vector<16x128xf32>
    %68 = arith.addf %60, %67 : vector<16x128xf32>
    %c4 = arith.constant 4 : index
    %c0_25 = arith.constant 0 : index
    %69 = vector.load %arg2[%c4, %c0_25] : memref<18x128xf32, #tpu.memory_space<vmem>>, vector<1x128xf32>
    %70 = vector.broadcast %69 : vector<1x128xf32> to vector<16x128xf32>
    %71 = arith.mulf %23, %70 : vector<16x128xf32>
    %72 = arith.addf %64, %71 : vector<16x128xf32>
    %c13 = arith.constant 13 : index
    %c0_26 = arith.constant 0 : index
    %73 = vector.load %arg2[%c13, %c0_26] : memref<18x128xf32, #tpu.memory_space<vmem>>, vector<1x128xf32>
    %74 = vector.broadcast %73 : vector<1x128xf32> to vector<16x128xf32>
    %75 = arith.mulf %23, %74 : vector<16x128xf32>
    %76 = arith.addf %68, %75 : vector<16x128xf32>
    %c5 = arith.constant 5 : index
    %c0_27 = arith.constant 0 : index
    %77 = vector.load %arg2[%c5, %c0_27] : memref<18x128xf32, #tpu.memory_space<vmem>>, vector<1x128xf32>
    %78 = vector.broadcast %77 : vector<1x128xf32> to vector<16x128xf32>
    %79 = arith.mulf %29, %78 : vector<16x128xf32>
    %80 = arith.addf %72, %79 : vector<16x128xf32>
    %c14 = arith.constant 14 : index
    %c0_28 = arith.constant 0 : index
    %81 = vector.load %arg2[%c14, %c0_28] : memref<18x128xf32, #tpu.memory_space<vmem>>, vector<1x128xf32>
    %82 = vector.broadcast %81 : vector<1x128xf32> to vector<16x128xf32>
    %83 = arith.mulf %29, %82 : vector<16x128xf32>
    %84 = arith.addf %76, %83 : vector<16x128xf32>
    %c15_i32_29 = arith.constant 15 : i32
    %85 = tpu.dynamic_rotate %26 by %c15_i32_29 dim 0 : vector<16x128xf32>, i32 -> vector<16x128xf32>
    %c1_i32_30 = arith.constant 1 : i32
    %86 = tpu.dynamic_rotate %26 by %c1_i32_30 dim 0 : vector<16x128xf32>, i32 -> vector<16x128xf32>
    %87 = arith.select %11, %86, %85 : vector<16x128xi1>, vector<16x128xf32>
    %c6 = arith.constant 6 : index
    %c0_31 = arith.constant 0 : index
    %88 = vector.load %arg2[%c6, %c0_31] : memref<18x128xf32, #tpu.memory_space<vmem>>, vector<1x128xf32>
    %89 = vector.broadcast %88 : vector<1x128xf32> to vector<16x128xf32>
    %90 = arith.mulf %87, %89 : vector<16x128xf32>
    %91 = arith.addf %80, %90 : vector<16x128xf32>
    %c15 = arith.constant 15 : index
    %c0_32 = arith.constant 0 : index
    %92 = vector.load %arg2[%c15, %c0_32] : memref<18x128xf32, #tpu.memory_space<vmem>>, vector<1x128xf32>
    %93 = vector.broadcast %92 : vector<1x128xf32> to vector<16x128xf32>
    %94 = arith.mulf %87, %93 : vector<16x128xf32>
    %95 = arith.addf %84, %94 : vector<16x128xf32>
    %c15_i32_33 = arith.constant 15 : i32
    %96 = tpu.dynamic_rotate %23 by %c15_i32_33 dim 0 : vector<16x128xf32>, i32 -> vector<16x128xf32>
    %c1_i32_34 = arith.constant 1 : i32
    %97 = tpu.dynamic_rotate %23 by %c1_i32_34 dim 0 : vector<16x128xf32>, i32 -> vector<16x128xf32>
    %98 = arith.select %11, %97, %96 : vector<16x128xi1>, vector<16x128xf32>
    %c7 = arith.constant 7 : index
    %c0_35 = arith.constant 0 : index
    %99 = vector.load %arg2[%c7, %c0_35] : memref<18x128xf32, #tpu.memory_space<vmem>>, vector<1x128xf32>
    %100 = vector.broadcast %99 : vector<1x128xf32> to vector<16x128xf32>
    %101 = arith.mulf %98, %100 : vector<16x128xf32>
    %102 = arith.addf %91, %101 : vector<16x128xf32>
    %c16 = arith.constant 16 : index
    %c0_36 = arith.constant 0 : index
    %103 = vector.load %arg2[%c16, %c0_36] : memref<18x128xf32, #tpu.memory_space<vmem>>, vector<1x128xf32>
    %104 = vector.broadcast %103 : vector<1x128xf32> to vector<16x128xf32>
    %105 = arith.mulf %98, %104 : vector<16x128xf32>
    %106 = arith.addf %95, %105 : vector<16x128xf32>
    %c15_i32_37 = arith.constant 15 : i32
    %107 = tpu.dynamic_rotate %29 by %c15_i32_37 dim 0 : vector<16x128xf32>, i32 -> vector<16x128xf32>
    %c1_i32_38 = arith.constant 1 : i32
    %108 = tpu.dynamic_rotate %29 by %c1_i32_38 dim 0 : vector<16x128xf32>, i32 -> vector<16x128xf32>
    %109 = arith.select %11, %108, %107 : vector<16x128xi1>, vector<16x128xf32>
    %c8 = arith.constant 8 : index
    %c0_39 = arith.constant 0 : index
    %110 = vector.load %arg2[%c8, %c0_39] : memref<18x128xf32, #tpu.memory_space<vmem>>, vector<1x128xf32>
    %111 = vector.broadcast %110 : vector<1x128xf32> to vector<16x128xf32>
    %112 = arith.mulf %109, %111 : vector<16x128xf32>
    %113 = arith.addf %102, %112 : vector<16x128xf32>
    %c17 = arith.constant 17 : index
    %c0_40 = arith.constant 0 : index
    %114 = vector.load %arg2[%c17, %c0_40] : memref<18x128xf32, #tpu.memory_space<vmem>>, vector<1x128xf32>
    %115 = vector.broadcast %114 : vector<1x128xf32> to vector<16x128xf32>
    %116 = arith.mulf %109, %115 : vector<16x128xf32>
    %117 = arith.addf %106, %116 : vector<16x128xf32>
    %c96_i32 = arith.constant 96 : i32
    %118 = tpu.dynamic_rotate %113 by %c96_i32 dim 1 : vector<16x128xf32>, i32 -> vector<16x128xf32>
    %119 = arith.addf %113, %118 : vector<16x128xf32>
    %c64_i32 = arith.constant 64 : i32
    %120 = tpu.dynamic_rotate %113 by %c64_i32 dim 1 : vector<16x128xf32>, i32 -> vector<16x128xf32>
    %121 = arith.addf %119, %120 : vector<16x128xf32>
    %c32_i32 = arith.constant 32 : i32
    %122 = tpu.dynamic_rotate %113 by %c32_i32 dim 1 : vector<16x128xf32>, i32 -> vector<16x128xf32>
    %123 = arith.addf %121, %122 : vector<16x128xf32>
    %c0_41 = arith.constant 0 : index
    %124 = memref.load %arg3[%c0_41] : memref<2xf32, #tpu.memory_space<smem>>
    %125 = vector.broadcast %124 : f32 to vector<16x128xf32>
    %126 = arith.addf %123, %125 : vector<16x128xf32>
    %c96_i32_42 = arith.constant 96 : i32
    %127 = tpu.dynamic_rotate %117 by %c96_i32_42 dim 1 : vector<16x128xf32>, i32 -> vector<16x128xf32>
    %128 = arith.addf %117, %127 : vector<16x128xf32>
    %c64_i32_43 = arith.constant 64 : i32
    %129 = tpu.dynamic_rotate %117 by %c64_i32_43 dim 1 : vector<16x128xf32>, i32 -> vector<16x128xf32>
    %130 = arith.addf %128, %129 : vector<16x128xf32>
    %c32_i32_44 = arith.constant 32 : i32
    %131 = tpu.dynamic_rotate %117 by %c32_i32_44 dim 1 : vector<16x128xf32>, i32 -> vector<16x128xf32>
    %132 = arith.addf %130, %131 : vector<16x128xf32>
    %c1_45 = arith.constant 1 : index
    %133 = memref.load %arg3[%c1_45] : memref<2xf32, #tpu.memory_space<smem>>
    %134 = vector.broadcast %133 : f32 to vector<16x128xf32>
    %135 = arith.addf %132, %134 : vector<16x128xf32>
    %c32_i32_46 = arith.constant 32 : i32
    %136 = vector.broadcast %c32_i32_46 : i32 to vector<16x128xi32>
    %137 = arith.cmpi sge, %1, %136 : vector<16x128xi32>
    %c64_i32_47 = arith.constant 64 : i32
    %138 = vector.broadcast %c64_i32_47 : i32 to vector<16x128xi32>
    %139 = arith.cmpi slt, %1, %138 : vector<16x128xi32>
    %140 = arith.andi %137, %139 : vector<16x128xi1>
    %c32_i32_48 = arith.constant 32 : i32
    %141 = tpu.dynamic_rotate %135 by %c32_i32_48 dim 1 : vector<16x128xf32>, i32 -> vector<16x128xf32>
    %142 = arith.select %140, %141, %126 : vector<16x128xi1>, vector<16x128xf32>
    %c64_i32_49 = arith.constant 64 : i32
    %143 = vector.broadcast %c64_i32_49 : i32 to vector<16x128xi32>
    %144 = arith.cmpi slt, %1, %143 : vector<16x128xi32>
    %cst_50 = arith.constant 0.000000e+00 : f32
    %145 = vector.broadcast %cst_50 : f32 to vector<16x128xf32>
    %146 = arith.select %144, %142, %145 : vector<16x128xi1>, vector<16x128xf32>
    %cst_51 = arith.constant 0.000000e+00 : f32
    %147 = vector.broadcast %cst_51 : f32 to vector<16x128xf32>
    %148 = arith.cmpf ogt, %146, %147 : vector<16x128xf32>
    %149 = math.exp %146 : vector<16x128xf32>
    %cst_52 = arith.constant 1.000000e+00 : f32
    %150 = vector.broadcast %cst_52 : f32 to vector<16x128xf32>
    %151 = arith.subf %149, %150 : vector<16x128xf32>
    %cst_53 = arith.constant 1.67326319 : f32
    %152 = vector.broadcast %cst_53 : f32 to vector<16x128xf32>
    %153 = arith.mulf %152, %151 : vector<16x128xf32>
    %154 = arith.select %148, %146, %153 : vector<16x128xi1>, vector<16x128xf32>
    %cst_54 = arith.constant 1.05070102 : f32
    %155 = vector.broadcast %cst_54 : f32 to vector<16x128xf32>
    %156 = arith.mulf %155, %154 : vector<16x128xf32>
    %c1_i32_55 = arith.constant 1 : i32
    %157 = tpu.dynamic_rotate %156 by %c1_i32_55 dim 1 : vector<16x128xf32>, i32 -> vector<16x128xf32>
    %c127_i32_56 = arith.constant 127 : i32
    %158 = tpu.dynamic_rotate %156 by %c127_i32_56 dim 1 : vector<16x128xf32>, i32 -> vector<16x128xf32>
    %159 = arith.select %5, %158, %157 : vector<16x128xi1>, vector<16x128xf32>
    %c127_i32_57 = arith.constant 127 : i32
    %160 = tpu.dynamic_rotate %156 by %c127_i32_57 dim 1 : vector<16x128xf32>, i32 -> vector<16x128xf32>
    %c1_i32_58 = arith.constant 1 : i32
    %161 = tpu.dynamic_rotate %156 by %c1_i32_58 dim 1 : vector<16x128xf32>, i32 -> vector<16x128xf32>
    %162 = arith.select %7, %161, %160 : vector<16x128xi1>, vector<16x128xf32>
    %c1_i32_59 = arith.constant 1 : i32
    %163 = tpu.dynamic_rotate %159 by %c1_i32_59 dim 0 : vector<16x128xf32>, i32 -> vector<16x128xf32>
    %c15_i32_60 = arith.constant 15 : i32
    %164 = tpu.dynamic_rotate %159 by %c15_i32_60 dim 0 : vector<16x128xf32>, i32 -> vector<16x128xf32>
    %165 = arith.select %9, %164, %163 : vector<16x128xi1>, vector<16x128xf32>
    %c0_61 = arith.constant 0 : index
    %c0_62 = arith.constant 0 : index
    %166 = vector.load %arg4[%c0_61, %c0_62] : memref<36x128xf32, #tpu.memory_space<vmem>>, vector<1x128xf32>
    %167 = vector.broadcast %166 : vector<1x128xf32> to vector<16x128xf32>
    %168 = arith.mulf %165, %167 : vector<16x128xf32>
    %c9_63 = arith.constant 9 : index
    %c0_64 = arith.constant 0 : index
    %169 = vector.load %arg4[%c9_63, %c0_64] : memref<36x128xf32, #tpu.memory_space<vmem>>, vector<1x128xf32>
    %170 = vector.broadcast %169 : vector<1x128xf32> to vector<16x128xf32>
    %171 = arith.mulf %165, %170 : vector<16x128xf32>
    %c18 = arith.constant 18 : index
    %c0_65 = arith.constant 0 : index
    %172 = vector.load %arg4[%c18, %c0_65] : memref<36x128xf32, #tpu.memory_space<vmem>>, vector<1x128xf32>
    %173 = vector.broadcast %172 : vector<1x128xf32> to vector<16x128xf32>
    %174 = arith.mulf %165, %173 : vector<16x128xf32>
    %c27 = arith.constant 27 : index
    %c0_66 = arith.constant 0 : index
    %175 = vector.load %arg4[%c27, %c0_66] : memref<36x128xf32, #tpu.memory_space<vmem>>, vector<1x128xf32>
    %176 = vector.broadcast %175 : vector<1x128xf32> to vector<16x128xf32>
    %177 = arith.mulf %165, %176 : vector<16x128xf32>
    %c1_i32_67 = arith.constant 1 : i32
    %178 = tpu.dynamic_rotate %156 by %c1_i32_67 dim 0 : vector<16x128xf32>, i32 -> vector<16x128xf32>
    %c15_i32_68 = arith.constant 15 : i32
    %179 = tpu.dynamic_rotate %156 by %c15_i32_68 dim 0 : vector<16x128xf32>, i32 -> vector<16x128xf32>
    %180 = arith.select %9, %179, %178 : vector<16x128xi1>, vector<16x128xf32>
    %c1_69 = arith.constant 1 : index
    %c0_70 = arith.constant 0 : index
    %181 = vector.load %arg4[%c1_69, %c0_70] : memref<36x128xf32, #tpu.memory_space<vmem>>, vector<1x128xf32>
    %182 = vector.broadcast %181 : vector<1x128xf32> to vector<16x128xf32>
    %183 = arith.mulf %180, %182 : vector<16x128xf32>
    %184 = arith.addf %168, %183 : vector<16x128xf32>
    %c10_71 = arith.constant 10 : index
    %c0_72 = arith.constant 0 : index
    %185 = vector.load %arg4[%c10_71, %c0_72] : memref<36x128xf32, #tpu.memory_space<vmem>>, vector<1x128xf32>
    %186 = vector.broadcast %185 : vector<1x128xf32> to vector<16x128xf32>
    %187 = arith.mulf %180, %186 : vector<16x128xf32>
    %188 = arith.addf %171, %187 : vector<16x128xf32>
    %c19 = arith.constant 19 : index
    %c0_73 = arith.constant 0 : index
    %189 = vector.load %arg4[%c19, %c0_73] : memref<36x128xf32, #tpu.memory_space<vmem>>, vector<1x128xf32>
    %190 = vector.broadcast %189 : vector<1x128xf32> to vector<16x128xf32>
    %191 = arith.mulf %180, %190 : vector<16x128xf32>
    %192 = arith.addf %174, %191 : vector<16x128xf32>
    %c28 = arith.constant 28 : index
    %c0_74 = arith.constant 0 : index
    %193 = vector.load %arg4[%c28, %c0_74] : memref<36x128xf32, #tpu.memory_space<vmem>>, vector<1x128xf32>
    %194 = vector.broadcast %193 : vector<1x128xf32> to vector<16x128xf32>
    %195 = arith.mulf %180, %194 : vector<16x128xf32>
    %196 = arith.addf %177, %195 : vector<16x128xf32>
    %c1_i32_75 = arith.constant 1 : i32
    %197 = tpu.dynamic_rotate %162 by %c1_i32_75 dim 0 : vector<16x128xf32>, i32 -> vector<16x128xf32>
    %c15_i32_76 = arith.constant 15 : i32
    %198 = tpu.dynamic_rotate %162 by %c15_i32_76 dim 0 : vector<16x128xf32>, i32 -> vector<16x128xf32>
    %199 = arith.select %9, %198, %197 : vector<16x128xi1>, vector<16x128xf32>
    %c2_77 = arith.constant 2 : index
    %c0_78 = arith.constant 0 : index
    %200 = vector.load %arg4[%c2_77, %c0_78] : memref<36x128xf32, #tpu.memory_space<vmem>>, vector<1x128xf32>
    %201 = vector.broadcast %200 : vector<1x128xf32> to vector<16x128xf32>
    %202 = arith.mulf %199, %201 : vector<16x128xf32>
    %203 = arith.addf %184, %202 : vector<16x128xf32>
    %c11_79 = arith.constant 11 : index
    %c0_80 = arith.constant 0 : index
    %204 = vector.load %arg4[%c11_79, %c0_80] : memref<36x128xf32, #tpu.memory_space<vmem>>, vector<1x128xf32>
    %205 = vector.broadcast %204 : vector<1x128xf32> to vector<16x128xf32>
    %206 = arith.mulf %199, %205 : vector<16x128xf32>
    %207 = arith.addf %188, %206 : vector<16x128xf32>
    %c20 = arith.constant 20 : index
    %c0_81 = arith.constant 0 : index
    %208 = vector.load %arg4[%c20, %c0_81] : memref<36x128xf32, #tpu.memory_space<vmem>>, vector<1x128xf32>
    %209 = vector.broadcast %208 : vector<1x128xf32> to vector<16x128xf32>
    %210 = arith.mulf %199, %209 : vector<16x128xf32>
    %211 = arith.addf %192, %210 : vector<16x128xf32>
    %c29 = arith.constant 29 : index
    %c0_82 = arith.constant 0 : index
    %212 = vector.load %arg4[%c29, %c0_82] : memref<36x128xf32, #tpu.memory_space<vmem>>, vector<1x128xf32>
    %213 = vector.broadcast %212 : vector<1x128xf32> to vector<16x128xf32>
    %214 = arith.mulf %199, %213 : vector<16x128xf32>
    %215 = arith.addf %196, %214 : vector<16x128xf32>
    %c3_83 = arith.constant 3 : index
    %c0_84 = arith.constant 0 : index
    %216 = vector.load %arg4[%c3_83, %c0_84] : memref<36x128xf32, #tpu.memory_space<vmem>>, vector<1x128xf32>
    %217 = vector.broadcast %216 : vector<1x128xf32> to vector<16x128xf32>
    %218 = arith.mulf %159, %217 : vector<16x128xf32>
    %219 = arith.addf %203, %218 : vector<16x128xf32>
    %c12_85 = arith.constant 12 : index
    %c0_86 = arith.constant 0 : index
    %220 = vector.load %arg4[%c12_85, %c0_86] : memref<36x128xf32, #tpu.memory_space<vmem>>, vector<1x128xf32>
    %221 = vector.broadcast %220 : vector<1x128xf32> to vector<16x128xf32>
    %222 = arith.mulf %159, %221 : vector<16x128xf32>
    %223 = arith.addf %207, %222 : vector<16x128xf32>
    %c21 = arith.constant 21 : index
    %c0_87 = arith.constant 0 : index
    %224 = vector.load %arg4[%c21, %c0_87] : memref<36x128xf32, #tpu.memory_space<vmem>>, vector<1x128xf32>
    %225 = vector.broadcast %224 : vector<1x128xf32> to vector<16x128xf32>
    %226 = arith.mulf %159, %225 : vector<16x128xf32>
    %227 = arith.addf %211, %226 : vector<16x128xf32>
    %c30 = arith.constant 30 : index
    %c0_88 = arith.constant 0 : index
    %228 = vector.load %arg4[%c30, %c0_88] : memref<36x128xf32, #tpu.memory_space<vmem>>, vector<1x128xf32>
    %229 = vector.broadcast %228 : vector<1x128xf32> to vector<16x128xf32>
    %230 = arith.mulf %159, %229 : vector<16x128xf32>
    %231 = arith.addf %215, %230 : vector<16x128xf32>
    %c4_89 = arith.constant 4 : index
    %c0_90 = arith.constant 0 : index
    %232 = vector.load %arg4[%c4_89, %c0_90] : memref<36x128xf32, #tpu.memory_space<vmem>>, vector<1x128xf32>
    %233 = vector.broadcast %232 : vector<1x128xf32> to vector<16x128xf32>
    %234 = arith.mulf %156, %233 : vector<16x128xf32>
    %235 = arith.addf %219, %234 : vector<16x128xf32>
    %c13_91 = arith.constant 13 : index
    %c0_92 = arith.constant 0 : index
    %236 = vector.load %arg4[%c13_91, %c0_92] : memref<36x128xf32, #tpu.memory_space<vmem>>, vector<1x128xf32>
    %237 = vector.broadcast %236 : vector<1x128xf32> to vector<16x128xf32>
    %238 = arith.mulf %156, %237 : vector<16x128xf32>
    %239 = arith.addf %223, %238 : vector<16x128xf32>
    %c22 = arith.constant 22 : index
    %c0_93 = arith.constant 0 : index
    %240 = vector.load %arg4[%c22, %c0_93] : memref<36x128xf32, #tpu.memory_space<vmem>>, vector<1x128xf32>
    %241 = vector.broadcast %240 : vector<1x128xf32> to vector<16x128xf32>
    %242 = arith.mulf %156, %241 : vector<16x128xf32>
    %243 = arith.addf %227, %242 : vector<16x128xf32>
    %c31 = arith.constant 31 : index
    %c0_94 = arith.constant 0 : index
    %244 = vector.load %arg4[%c31, %c0_94] : memref<36x128xf32, #tpu.memory_space<vmem>>, vector<1x128xf32>
    %245 = vector.broadcast %244 : vector<1x128xf32> to vector<16x128xf32>
    %246 = arith.mulf %156, %245 : vector<16x128xf32>
    %247 = arith.addf %231, %246 : vector<16x128xf32>
    %c5_95 = arith.constant 5 : index
    %c0_96 = arith.constant 0 : index
    %248 = vector.load %arg4[%c5_95, %c0_96] : memref<36x128xf32, #tpu.memory_space<vmem>>, vector<1x128xf32>
    %249 = vector.broadcast %248 : vector<1x128xf32> to vector<16x128xf32>
    %250 = arith.mulf %162, %249 : vector<16x128xf32>
    %251 = arith.addf %235, %250 : vector<16x128xf32>
    %c14_97 = arith.constant 14 : index
    %c0_98 = arith.constant 0 : index
    %252 = vector.load %arg4[%c14_97, %c0_98] : memref<36x128xf32, #tpu.memory_space<vmem>>, vector<1x128xf32>
    %253 = vector.broadcast %252 : vector<1x128xf32> to vector<16x128xf32>
    %254 = arith.mulf %162, %253 : vector<16x128xf32>
    %255 = arith.addf %239, %254 : vector<16x128xf32>
    %c23 = arith.constant 23 : index
    %c0_99 = arith.constant 0 : index
    %256 = vector.load %arg4[%c23, %c0_99] : memref<36x128xf32, #tpu.memory_space<vmem>>, vector<1x128xf32>
    %257 = vector.broadcast %256 : vector<1x128xf32> to vector<16x128xf32>
    %258 = arith.mulf %162, %257 : vector<16x128xf32>
    %259 = arith.addf %243, %258 : vector<16x128xf32>
    %c32 = arith.constant 32 : index
    %c0_100 = arith.constant 0 : index
    %260 = vector.load %arg4[%c32, %c0_100] : memref<36x128xf32, #tpu.memory_space<vmem>>, vector<1x128xf32>
    %261 = vector.broadcast %260 : vector<1x128xf32> to vector<16x128xf32>
    %262 = arith.mulf %162, %261 : vector<16x128xf32>
    %263 = arith.addf %247, %262 : vector<16x128xf32>
    %c15_i32_101 = arith.constant 15 : i32
    %264 = tpu.dynamic_rotate %159 by %c15_i32_101 dim 0 : vector<16x128xf32>, i32 -> vector<16x128xf32>
    %c1_i32_102 = arith.constant 1 : i32
    %265 = tpu.dynamic_rotate %159 by %c1_i32_102 dim 0 : vector<16x128xf32>, i32 -> vector<16x128xf32>
    %266 = arith.select %11, %265, %264 : vector<16x128xi1>, vector<16x128xf32>
    %c6_103 = arith.constant 6 : index
    %c0_104 = arith.constant 0 : index
    %267 = vector.load %arg4[%c6_103, %c0_104] : memref<36x128xf32, #tpu.memory_space<vmem>>, vector<1x128xf32>
    %268 = vector.broadcast %267 : vector<1x128xf32> to vector<16x128xf32>
    %269 = arith.mulf %266, %268 : vector<16x128xf32>
    %270 = arith.addf %251, %269 : vector<16x128xf32>
    %c15_105 = arith.constant 15 : index
    %c0_106 = arith.constant 0 : index
    %271 = vector.load %arg4[%c15_105, %c0_106] : memref<36x128xf32, #tpu.memory_space<vmem>>, vector<1x128xf32>
    %272 = vector.broadcast %271 : vector<1x128xf32> to vector<16x128xf32>
    %273 = arith.mulf %266, %272 : vector<16x128xf32>
    %274 = arith.addf %255, %273 : vector<16x128xf32>
    %c24 = arith.constant 24 : index
    %c0_107 = arith.constant 0 : index
    %275 = vector.load %arg4[%c24, %c0_107] : memref<36x128xf32, #tpu.memory_space<vmem>>, vector<1x128xf32>
    %276 = vector.broadcast %275 : vector<1x128xf32> to vector<16x128xf32>
    %277 = arith.mulf %266, %276 : vector<16x128xf32>
    %278 = arith.addf %259, %277 : vector<16x128xf32>
    %c33 = arith.constant 33 : index
    %c0_108 = arith.constant 0 : index
    %279 = vector.load %arg4[%c33, %c0_108] : memref<36x128xf32, #tpu.memory_space<vmem>>, vector<1x128xf32>
    %280 = vector.broadcast %279 : vector<1x128xf32> to vector<16x128xf32>
    %281 = arith.mulf %266, %280 : vector<16x128xf32>
    %282 = arith.addf %263, %281 : vector<16x128xf32>
    %c15_i32_109 = arith.constant 15 : i32
    %283 = tpu.dynamic_rotate %156 by %c15_i32_109 dim 0 : vector<16x128xf32>, i32 -> vector<16x128xf32>
    %c1_i32_110 = arith.constant 1 : i32
    %284 = tpu.dynamic_rotate %156 by %c1_i32_110 dim 0 : vector<16x128xf32>, i32 -> vector<16x128xf32>
    %285 = arith.select %11, %284, %283 : vector<16x128xi1>, vector<16x128xf32>
    %c7_111 = arith.constant 7 : index
    %c0_112 = arith.constant 0 : index
    %286 = vector.load %arg4[%c7_111, %c0_112] : memref<36x128xf32, #tpu.memory_space<vmem>>, vector<1x128xf32>
    %287 = vector.broadcast %286 : vector<1x128xf32> to vector<16x128xf32>
    %288 = arith.mulf %285, %287 : vector<16x128xf32>
    %289 = arith.addf %270, %288 : vector<16x128xf32>
    %c16_113 = arith.constant 16 : index
    %c0_114 = arith.constant 0 : index
    %290 = vector.load %arg4[%c16_113, %c0_114] : memref<36x128xf32, #tpu.memory_space<vmem>>, vector<1x128xf32>
    %291 = vector.broadcast %290 : vector<1x128xf32> to vector<16x128xf32>
    %292 = arith.mulf %285, %291 : vector<16x128xf32>
    %293 = arith.addf %274, %292 : vector<16x128xf32>
    %c25 = arith.constant 25 : index
    %c0_115 = arith.constant 0 : index
    %294 = vector.load %arg4[%c25, %c0_115] : memref<36x128xf32, #tpu.memory_space<vmem>>, vector<1x128xf32>
    %295 = vector.broadcast %294 : vector<1x128xf32> to vector<16x128xf32>
    %296 = arith.mulf %285, %295 : vector<16x128xf32>
    %297 = arith.addf %278, %296 : vector<16x128xf32>
    %c34 = arith.constant 34 : index
    %c0_116 = arith.constant 0 : index
    %298 = vector.load %arg4[%c34, %c0_116] : memref<36x128xf32, #tpu.memory_space<vmem>>, vector<1x128xf32>
    %299 = vector.broadcast %298 : vector<1x128xf32> to vector<16x128xf32>
    %300 = arith.mulf %285, %299 : vector<16x128xf32>
    %301 = arith.addf %282, %300 : vector<16x128xf32>
    %c15_i32_117 = arith.constant 15 : i32
    %302 = tpu.dynamic_rotate %162 by %c15_i32_117 dim 0 : vector<16x128xf32>, i32 -> vector<16x128xf32>
    %c1_i32_118 = arith.constant 1 : i32
    %303 = tpu.dynamic_rotate %162 by %c1_i32_118 dim 0 : vector<16x128xf32>, i32 -> vector<16x128xf32>
    %304 = arith.select %11, %303, %302 : vector<16x128xi1>, vector<16x128xf32>
    %c8_119 = arith.constant 8 : index
    %c0_120 = arith.constant 0 : index
    %305 = vector.load %arg4[%c8_119, %c0_120] : memref<36x128xf32, #tpu.memory_space<vmem>>, vector<1x128xf32>
    %306 = vector.broadcast %305 : vector<1x128xf32> to vector<16x128xf32>
    %307 = arith.mulf %304, %306 : vector<16x128xf32>
    %308 = arith.addf %289, %307 : vector<16x128xf32>
    %c17_121 = arith.constant 17 : index
    %c0_122 = arith.constant 0 : index
    %309 = vector.load %arg4[%c17_121, %c0_122] : memref<36x128xf32, #tpu.memory_space<vmem>>, vector<1x128xf32>
    %310 = vector.broadcast %309 : vector<1x128xf32> to vector<16x128xf32>
    %311 = arith.mulf %304, %310 : vector<16x128xf32>
    %312 = arith.addf %293, %311 : vector<16x128xf32>
    %c26 = arith.constant 26 : index
    %c0_123 = arith.constant 0 : index
    %313 = vector.load %arg4[%c26, %c0_123] : memref<36x128xf32, #tpu.memory_space<vmem>>, vector<1x128xf32>
    %314 = vector.broadcast %313 : vector<1x128xf32> to vector<16x128xf32>
    %315 = arith.mulf %304, %314 : vector<16x128xf32>
    %316 = arith.addf %297, %315 : vector<16x128xf32>
    %c35 = arith.constant 35 : index
    %c0_124 = arith.constant 0 : index
    %317 = vector.load %arg4[%c35, %c0_124] : memref<36x128xf32, #tpu.memory_space<vmem>>, vector<1x128xf32>
    %318 = vector.broadcast %317 : vector<1x128xf32> to vector<16x128xf32>
    %319 = arith.mulf %304, %318 : vector<16x128xf32>
    %320 = arith.addf %301, %319 : vector<16x128xf32>
    %c96_i32_125 = arith.constant 96 : i32
    %321 = tpu.dynamic_rotate %308 by %c96_i32_125 dim 1 : vector<16x128xf32>, i32 -> vector<16x128xf32>
    %322 = arith.addf %308, %321 : vector<16x128xf32>
    %c0_126 = arith.constant 0 : index
    %323 = memref.load %arg5[%c0_126] : memref<4xf32, #tpu.memory_space<smem>>
    %324 = vector.broadcast %323 : f32 to vector<16x128xf32>
    %325 = arith.addf %322, %324 : vector<16x128xf32>
    %c96_i32_127 = arith.constant 96 : i32
    %326 = tpu.dynamic_rotate %312 by %c96_i32_127 dim 1 : vector<16x128xf32>, i32 -> vector<16x128xf32>
    %327 = arith.addf %312, %326 : vector<16x128xf32>
    %c1_128 = arith.constant 1 : index
    %328 = memref.load %arg5[%c1_128] : memref<4xf32, #tpu.memory_space<smem>>
    %329 = vector.broadcast %328 : f32 to vector<16x128xf32>
    %330 = arith.addf %327, %329 : vector<16x128xf32>
    %c96_i32_129 = arith.constant 96 : i32
    %331 = tpu.dynamic_rotate %316 by %c96_i32_129 dim 1 : vector<16x128xf32>, i32 -> vector<16x128xf32>
    %332 = arith.addf %316, %331 : vector<16x128xf32>
    %c2_130 = arith.constant 2 : index
    %333 = memref.load %arg5[%c2_130] : memref<4xf32, #tpu.memory_space<smem>>
    %334 = vector.broadcast %333 : f32 to vector<16x128xf32>
    %335 = arith.addf %332, %334 : vector<16x128xf32>
    %c96_i32_131 = arith.constant 96 : i32
    %336 = tpu.dynamic_rotate %320 by %c96_i32_131 dim 1 : vector<16x128xf32>, i32 -> vector<16x128xf32>
    %337 = arith.addf %320, %336 : vector<16x128xf32>
    %c3_132 = arith.constant 3 : index
    %338 = memref.load %arg5[%c3_132] : memref<4xf32, #tpu.memory_space<smem>>
    %339 = vector.broadcast %338 : f32 to vector<16x128xf32>
    %340 = arith.addf %337, %339 : vector<16x128xf32>
    %c32_i32_133 = arith.constant 32 : i32
    %341 = vector.broadcast %c32_i32_133 : i32 to vector<16x128xi32>
    %342 = arith.cmpi sge, %1, %341 : vector<16x128xi32>
    %c64_i32_134 = arith.constant 64 : i32
    %343 = vector.broadcast %c64_i32_134 : i32 to vector<16x128xi32>
    %344 = arith.cmpi slt, %1, %343 : vector<16x128xi32>
    %345 = arith.andi %342, %344 : vector<16x128xi1>
    %c32_i32_135 = arith.constant 32 : i32
    %346 = tpu.dynamic_rotate %330 by %c32_i32_135 dim 1 : vector<16x128xf32>, i32 -> vector<16x128xf32>
    %347 = arith.select %345, %346, %325 : vector<16x128xi1>, vector<16x128xf32>
    %c64_i32_136 = arith.constant 64 : i32
    %348 = vector.broadcast %c64_i32_136 : i32 to vector<16x128xi32>
    %349 = arith.cmpi sge, %1, %348 : vector<16x128xi32>
    %c96_i32_137 = arith.constant 96 : i32
    %350 = vector.broadcast %c96_i32_137 : i32 to vector<16x128xi32>
    %351 = arith.cmpi slt, %1, %350 : vector<16x128xi32>
    %352 = arith.andi %349, %351 : vector<16x128xi1>
    %c64_i32_138 = arith.constant 64 : i32
    %353 = tpu.dynamic_rotate %335 by %c64_i32_138 dim 1 : vector<16x128xf32>, i32 -> vector<16x128xf32>
    %354 = arith.select %352, %353, %347 : vector<16x128xi1>, vector<16x128xf32>
    %c96_i32_139 = arith.constant 96 : i32
    %355 = vector.broadcast %c96_i32_139 : i32 to vector<16x128xi32>
    %356 = arith.cmpi sge, %1, %355 : vector<16x128xi32>
    %c128_i32 = arith.constant 128 : i32
    %357 = vector.broadcast %c128_i32 : i32 to vector<16x128xi32>
    %358 = arith.cmpi slt, %1, %357 : vector<16x128xi32>
    %359 = arith.andi %356, %358 : vector<16x128xi1>
    %c96_i32_140 = arith.constant 96 : i32
    %360 = tpu.dynamic_rotate %340 by %c96_i32_140 dim 1 : vector<16x128xf32>, i32 -> vector<16x128xf32>
    %361 = arith.select %359, %360, %354 : vector<16x128xi1>, vector<16x128xf32>
    %cst_141 = arith.constant 2.500000e-01 : f32
    %362 = vector.broadcast %cst_141 : f32 to vector<16x128xf32>
    %363 = arith.mulf %362, %361 : vector<16x128xf32>
    %364 = arith.addf %363, %13 : vector<16x128xf32>
    %c0_142 = arith.constant 0 : index
    %c0_143 = arith.constant 0 : index
    %c0_144 = arith.constant 0 : index
    %365 = vector.load %arg6[%c0_142, %c0_143, %c0_144] : memref<1x16x128xf32, #tpu.memory_space<vmem>>, vector<1x16x128xf32>
    %366 = vector.shape_cast %365 : vector<1x16x128xf32> to vector<16x128xf32>
    %367 = vector.shape_cast %364 : vector<16x128xf32> to vector<1x16x128xf32>
    tpu.vector_store %arg6[%c0_142, %c0_143, %c0_144], %367 {strides = array<i32>} : memref<1x16x128xf32, #tpu.memory_space<vmem>>, vector<1x16x128xf32>,
    return
  }
  func.func @transform_0(%arg0: i32) -> (i32, i32, i32) {
    %c0_i32 = arith.constant 0 : i32
    %c0_i32_0 = arith.constant 0 : i32
    %c0_i32_1 = arith.constant 0 : i32
    return %arg0, %c0_i32, %c0_i32_0 : i32, i32, i32
  }
  func.func @transform_1(%arg0: i32) -> (i32, i32) {
    %c0_i32 = arith.constant 0 : i32
    %c0_i32_0 = arith.constant 0 : i32
    %c0_i32_1 = arith.constant 0 : i32
    return %c0_i32, %c0_i32_0 : i32, i32
  }
  func.func @transform_2(%arg0: i32) -> i32 {
    %c0_i32 = arith.constant 0 : i32
    %c0_i32_0 = arith.constant 0 : i32
    return %c0_i32 : i32
  }
  func.func @transform_3(%arg0: i32) -> (i32, i32) {
    %c0_i32 = arith.constant 0 : i32
    %c0_i32_0 = arith.constant 0 : i32
    %c0_i32_1 = arith.constant 0 : i32
    return %c0_i32, %c0_i32_0 : i32, i32
  }
  func.func @transform_4(%arg0: i32) -> i32 {
    %c0_i32 = arith.constant 0 : i32
    %c0_i32_0 = arith.constant 0 : i32
    return %c0_i32 : i32
  }
  func.func @transform_5(%arg0: i32) -> (i32, i32, i32) {
    %c0_i32 = arith.constant 0 : i32
    %c0_i32_0 = arith.constant 0 : i32
    %c0_i32_1 = arith.constant 0 : i32
    return %arg0, %c0_i32, %c0_i32_0 : i32, i32, i32
  }
}

</mosaic_0001>

<bundles_post_ra>
// kernel: tpu_custom_call.1
= control target key start
LH: loop header
LB: loop body
LE: loop exit
PB: predicated region body
PF: predicated region fallthrough
CT: control target
= control target key end

     0   :  { %10 = vsyncpa [#allocation3], 0  ;;  %s1521_s0 = inlined_call_operand.hbm [shape: f32[1,16,128], index: 0, kind: input, shape index: {}]   ;;  %s1522_s1 = inlined_call_operand.hbm [shape: f32[18,128], index: 1, kind: input, shape index: {}]   ;;  %s1523_s2 = inlined_call_operand.vmem [shape: f32[2], index: 2, kind: input, shape index: {}]   ;;  %s1524_s3 = inlined_call_operand.hbm [shape: f32[36,128], index: 3, kind: input, shape index: {}]   ;;  %s1525_s4 = inlined_call_operand.vmem [shape: f32[4], index: 4, kind: input, shape index: {}]   ;;  %s1526_s5 = inlined_call_operand.hbm [shape: f32[1,16,128], index: 5, kind: output, shape index: {}]  }
   0x1   :  { %11 = vsyncpa [#allocation7], 0 }
   0x2   :  { %12 = vsyncpa [#allocation5], 0 }
   0x3   :  { %13 = vsyncpa [#allocation11], 0 }
   0x4   :  { %14 = vsyncpa [#allocation4], 0  ;;  %s1047_s18 = smov [#allocation6]   ;;  %s1048_s20 = smov [#allocation2]  }
   0x5   :  { %s32_s19 = sshll.u32 %s1047_s18, 4  ;;  %s20_s21 = sshll.u32 %s1048_s20, 4  ;;  %s33_s19 = int_to_ptr.vmem [resolvable:$true] %s32_s19  ;;  %s21_s21 = int_to_ptr.vmem [resolvable:$true] %s20_s21 }
   0x6   :  { %s939_s22 = scalar_lea.vmem %s33_s19, 384  ;;  %p944_p1 = scmp.lt.s32.totalorder %s33_s19, %s33_s19 }
   0x7   :  { %p940_p0 = scmp.ne.s32.totalorder %s33_s19, %s939_s22  ;;  %p945_p2 = scmp.lt.s32.totalorder %s939_s22, %s939_s22 }
   0x9   :  { %p946_p3 = por %p945_p2, %p944_p1 }
   0xb   :  { %p947_p4 = pnand %p946_p3, %p940_p0 }
   0xd   :  { %950 = shalt.err (!%p947_p4)
}
   0xe   :  { %s1049_s23 = smov 128   ;;  %s1050_s24 = smov 8  }
   0xf   :  { %38 = dma.hbm_to_vmem [thread:$0]  %s1522_s1, 384, %s33_s19, [#allocation7], %s1049_s23, %s1049_s23, %s1050_s24  }
  0x10   :  { %s959_s27 = scalar_lea.vmem %s21_s21, 256  ;;  %p964_p6 = scmp.lt.s32.totalorder %s21_s21, %s21_s21 }
  0x11   :  { %p960_p5 = scmp.ne.s32.totalorder %s21_s21, %s959_s27  ;;  %p965_p7 = scmp.lt.s32.totalorder %s959_s27, %s959_s27 }
  0x13   :  { %p966_p8 = por %p965_p7, %p964_p6 }
  0x15   :  { %p967_p9 = pnand %p966_p8, %p960_p5 }
  0x17   :  { %970 = shalt.err (!%p967_p9)
}
  0x18   :  { %26 = dma.hbm_to_vmem [thread:$0]  %s1521_s0, 256, %s21_s21, [#allocation3], %s1049_s23, %s1049_s23, %s1050_s24  }
  0x19   :  { %s45_s7 = sshll.u32 %s1523_s2, 4  ;;  %s46_s7 = int_to_ptr.vmem [resolvable:$true] %s45_s7 }
  0x1a   :  { %s971_s1 = scalar_lea.vmem %s46_s7, 16  ;;  %p976_p11 = scmp.lt.s32.totalorder %s46_s7, %s46_s7 }
  0x1b   :  { %p972_p10 = scmp.ne.s32.totalorder %s46_s7, %s971_s1  ;;  %p977_p12 = scmp.lt.s32.totalorder %s971_s1, %s971_s1 }
  0x1d   :  { %p978_p13 = por %p977_p12, %p976_p11 }
  0x1f   :  { %p979_p0 = pnand %p978_p13, %p972_p10 }
  0x21   :  { %982 = shalt.err (!%p979_p0)
}
  0x22   :  { %s1051_s8 = smov [#allocation8]   ;;  %s1052_s9 = smov [#allocation9]  }
  0x23   :  { %48 = dma.vmem_to_smem %s46_s7, 16, %s1051_s8, [#allocation5]  }
  0x24   :  { %s54_s10 = sshll.u32 %s1052_s9, 4  ;;  %s67_s0 = sshll.u32 %s1525_s4, 4  ;;  %s55_s10 = int_to_ptr.vmem [resolvable:$true] %s54_s10  ;;  %s68_s0 = int_to_ptr.vmem [resolvable:$true] %s67_s0 }
  0x25   :  { %s991_s13 = scalar_lea.vmem %s55_s10, 640  ;;  %p996_p2 = scmp.lt.s32.totalorder %s55_s10, %s55_s10 }
  0x26   :  { %p992_p1 = scmp.ne.s32.totalorder %s55_s10, %s991_s13  ;;  %p997_p3 = scmp.lt.s32.totalorder %s991_s13, %s991_s13 }
  0x28   :  { %p998_p4 = por %p997_p3, %p996_p2 }
  0x2a   :  { %p999_p5 = pnand %p998_p4, %p992_p1 }
  0x2c   :  { %1002 = shalt.err (!%p999_p5)
}
  0x2d   :  { %60 = dma.hbm_to_vmem [thread:$0]  %s1524_s3, 640, %s55_s10, [#allocation7], %s1049_s23, %s1049_s23, %s1050_s24  }
  0x2e   :  { %s1003_s15 = scalar_lea.vmem %s68_s0, 16  ;;  %p1008_p7 = scmp.lt.s32.totalorder %s68_s0, %s68_s0 }
  0x2f   :  { %p1004_p6 = scmp.ne.s32.totalorder %s68_s0, %s1003_s15  ;;  %p1009_p8 = scmp.lt.s32.totalorder %s1003_s15, %s1003_s15 }
  0x31   :  { %p1010_p9 = por %p1009_p8, %p1008_p7 }
  0x33   :  { %p1011_p10 = pnand %p1010_p9, %p1004_p6 }
  0x35   :  { %1014 = shalt.err (!%p1011_p10)
}
  0x36   :  { %s1053_s4 = smov [#allocation10]  }
  0x37   :  { %70 = dma.vmem_to_smem %s68_s0, 16, %s1053_s4, [#allocation11]  }
  0x38   :  { %1035 = dma.done.wait [#allocation3], 256  }
  0x39   :  { %1036 = vsyncadd [#allocation3], 4294967040 }
  0x3a   :  { %1037 = dma.done.wait [#allocation7], 384  }
  0x3b   :  { %1038 = vsyncadd [#allocation7], 4294966912 }
  0x3c   :  { %1039 = dma.done.wait [#allocation5], 16  }
  0x3d   :  { %1040 = vsyncadd [#allocation5], 4294967280 }
  0x3e   :  { %1041 = dma.done.wait [#allocation7], 640  }
  0x3f   :  { %1042 = vsyncadd [#allocation7], 4294966656 }
  0x40   :  { %1043 = dma.done.wait [#allocation11], 16  }
  0x41   :  { %1044 = vsyncadd [#allocation11], 4294967280 }
  0x42   :  { %86 = sfence }
  0x43   :  { %v99_v0 = vld [vmem:[#allocation2] sm:$0xff]  ;;  %v100_v1 = vld [vmem:[#allocation2 + $0x8] sm:$0xff]  ;;  %v87_v8 = vlaneseq  ;;  %s1054_s3 = smov 127   ;;  %s1055_s16 = smov 1   ;;  %v850_v36 = vld [vmem:[#allocation6 + $0x1] ss:$0 sm:$0xff] }
  0x44   :  { %v103_v2 = vmul.f32 1.442695, %v99_v0  ;;  %v105_v3 = vmul.f32 1.442695, %v100_v1  ;;  %vm101_vm0 = vcmp.gt.f32.partialorder %v99_v0, 0.0  ;;  %vm102_vm1 = vcmp.gt.f32.partialorder %v100_v1, 0.0 }
  0x45   :  { %v1114_v11 = vshrl.u32 %v87_v8, 7  ;;  %v1156_v27 = vand.u32 127, %v87_v8  ;;  %v851_v37 = vld [vmem:[#allocation6 + $0xa] ss:$0 sm:$0xff]  ;;  %v856_v38 = vld [vmem:[#allocation6 + $0x4] ss:$0 sm:$0xff] }
  0x46   :  { %921 = vpow2.f32 %v103_v2  ;;  %v848_v42 = vld [vmem:[#allocation6] ss:$0 sm:$0xff]  ;;  %v849_v45 = vld [vmem:[#allocation6 + $0x9] ss:$0 sm:$0xff]  ;;  %v852_v58 = vld [vmem:[#allocation6 + $0x2] ss:$0 sm:$0xff] }
  0x47   :  { %923 = vpow2.f32 %v105_v3  ;;  %vm129_vm2 = vcmp.lt.s32.totalorder %v1114_v11, 1  ;;  %vm134_vm3 = vcmp.lt.s32.totalorder %v1114_v11, 7  ;;  %vm95_vm4 = vcmp.eq.s32.totalorder %v1114_v11, 0  ;;  %1539 = vst [vmem:[#allocation19_spill] sm:$0xff] %v1156_v27  ;;  %v853_v59 = vld [vmem:[#allocation6 + $0xb] ss:$0 sm:$0xff] }
  0x48   :  { %v1144_v23 = vadd.s32 8, %v1114_v11  ;;  %v92_v28 = vand.u32 15, %v1156_v27  ;;  %v857_v60 = vld [vmem:[#allocation6 + $0xd] ss:$0 sm:$0xff]  ;;  %v863_v3 = vld [vmem:[#allocation6 + $0x10] ss:$0 sm:$0xff] }
  0x49   :  { %s1056_s17 = smov 96   ;;  %s1057_s18 = smov 64   ;;  %vm367_vm8 = vcmp.ge.s32.totalorder %v1156_v27, 32  ;;  %vm368_vm9 = vcmp.lt.s32.totalorder %v1156_v27, 64  ;;  %v870_v32 = vld [vmem:[#allocation9 + $0x9] ss:$0 sm:$0xff] }
  0x4a   :  { %vm98_vm5 = vcmp.eq.s32.totalorder %v1144_v23, 15  ;;  %vm1159_vm6 = vcmp.eq.s32.totalorder %v92_v28, 0  ;;  %vm1163_vm7 = vcmp.eq.s32.totalorder %v92_v28, 15  ;;  %s1058_s19 = smov 32   ;;  %s866_s20 = sld [smem:[#allocation8 + $0x1]]  ;;  %vm1245_vm10 = vmand %vm367_vm8, %vm368_vm9 }
  0x4b   :  { %s341_s21 = sld [smem:[#allocation8]]  ;;  %v871_v27 = vld [vmem:[#allocation9 + $0x12] ss:$0 sm:$0xff]  ;;  %s1059_s28 = smov [#allocation12]  }
  0x4c   :  { %s905_s22 = sld [smem:[#allocation10 + $0x1]]  ;;  %s831_s29 = sshll.u32 %s1059_s28, 4  ;;  %s832_s29 = int_to_ptr.vmem [resolvable:$true] %s831_s29 }
  0x4d   :  { %s906_s25 = sld [smem:[#allocation10 + $0x2]]  ;;  %s1015_s30 = scalar_lea.vmem %s832_s29, 256 }
  0x4e   :  { %s907_s26 = sld [smem:[#allocation10 + $0x3]]  ;;  %p1016_p11 = scmp.ne.s32.totalorder %s832_s29, %s1015_s30 }
  0x4f   :  { %s762_s27 = sld [smem:[#allocation10]]  ;;  %p1020_p12 = scmp.lt.s32.totalorder %s832_s29, %s832_s29 }
  0x50   :  { %p1021_p13 = scmp.lt.s32.totalorder %s1015_s30, %s1015_s30 }
  0x52   :  { %p1022_p0 = por %p1021_p13, %p1020_p12 }
  0x53   :  { %v922_v4 = vpop.eup %921 }
  0x54   :  { %v924_v5 = vpop.eup %923  ;;  %v846_v6 = vadd.f32 -1.0, %v922_v4  ;;  %p1023_p1 = pnand %p1022_p0, %p1016_p11 }
  0x55   :  { %v847_v7 = vadd.f32 -1.0, %v924_v5 }
  0x56   :  { %v109_v9 = vmul.f32 1.6732632, %v846_v6 }
  0x57   :  { %v110_v10 = vmul.f32 1.6732632, %v847_v7 }
  0x58   :  { %v111_v12 = vsel %vm101_vm0, %v99_v0, %v109_v9 }
  0x59   :  { %v1116_v13 = vmul.f32 1.050701, %v111_v12  ;;  %v112_v14 = vsel %vm102_vm1, %v100_v1, %v110_v10  ;;  %v854_v10 = vld [vmem:[#allocation6 + $0x3] ss:$0 sm:$0xff] }
  0x5a   :  { %v1118_v15 = vmul.f32 1.050701, %v112_v14 }
  0x5b   :  { %119 = vrot.lane.b32.xlu1 %v1116_v13, %s1054_s3  ;;  %115 = vrot.lane.b32.xlu0 %v1116_v13, %s1055_s16  ;;  %v153_v16 = vrot.slane %v1116_v13, 7  ;;  %v157_v17 = vrot.slane %v1116_v13, 1 }
  0x5c   :  { %v154_v18 = vrot.slane %v1118_v15, 7  ;;  %v158_v19 = vrot.slane %v1118_v15, 1  ;;  %v233_v51 = vmul.f32 %v856_v38, %v1118_v15  ;;  %v242_v12 = vmul.f32 %v857_v60, %v1118_v15 }
  0x5e   :  { %v155_v20 = vsel %vm129_vm2, %v153_v16, %v154_v18  ;;  %v156_v21 = vsel %vm129_vm2, %v154_v18, %v153_v16  ;;  %v1137_v22 = vsel %vm134_vm3, %v157_v17, %v158_v19  ;;  %v160_v25 = vsel %vm134_vm3, %v158_v19, %v157_v17  ;;  %v855_v18 = vld [vmem:[#allocation6 + $0xc] ss:$0 sm:$0xff] }
  0x5f   :  { %121 = vrot.lane.b32.xlu1 %v1118_v15, %s1054_s3  ;;  %117 = vrot.lane.b32.xlu0 %v1118_v15, %s1055_s16  ;;  %v161_v24 = vsel %vm95_vm4, %v1137_v22, %v156_v21  ;;  %v1154_v26 = vsel %vm98_vm5, %v155_v20, %v160_v25  ;;  %v169_v52 = vmul.f32 %v850_v36, %v155_v20 }
  0x60   :  { %v178_v53 = vmul.f32 %v851_v37, %v155_v20  ;;  %v168_v4 = vmul.f32 %v850_v36, %v161_v24  ;;  %v177_v5 = vmul.f32 %v851_v37, %v161_v24  ;;  %v232_v20 = vmul.f32 %v856_v38, %v1116_v13  ;;  %v862_v38 = vld [vmem:[#allocation6 + $0x7] ss:$0 sm:$0xff] }
  0x61   :  { %v241_v21 = vmul.f32 %v857_v60, %v1116_v13  ;;  %v300_v24 = vmul.f32 %v863_v3, %v1154_v26  ;;  %v860_v13 = vld [vmem:[#allocation6 + $0x6] ss:$0 sm:$0xff] }
  0xcd   :  { %v120_v30 = vpop.permute.xlu1 %119  ;;  %v116_v31 = vpop.permute.xlu0 %115 }
  0xce   :  { %v123_v33 = vsel %vm1159_vm6, %v120_v30, %v116_v31  ;;  %v1171_v34 = vsel %vm1163_vm7, %v116_v31, %v120_v30 }
  0xcf   :  { %v127_v40 = vrot.slane %v123_v33, 7  ;;  %v132_v41 = vrot.slane %v123_v33, 1  ;;  %v181_v50 = vrot.slane %v1171_v34, 7  ;;  %v185_v54 = vrot.slane %v1171_v34, 1 }
  0xd1   :  { %v122_v35 = vpop.permute.xlu1 %121  ;;  %v118_v39 = vpop.permute.xlu0 %117 }
  0xd2   :  { %v124_v43 = vsel %vm1159_vm6, %v122_v35, %v118_v39  ;;  %v1177_v44 = vsel %vm1163_vm7, %v118_v39, %v122_v35  ;;  %v858_v39 = vld [vmem:[#allocation6 + $0x5] ss:$0 sm:$0xff] }
  0xd3   :  { %v128_v46 = vrot.slane %v124_v43, 7  ;;  %v133_v47 = vrot.slane %v124_v43, 1  ;;  %v182_v48 = vrot.slane %v1177_v44, 7  ;;  %v186_v49 = vrot.slane %v1177_v44, 1 }
  0xd4   :  { %v215_v19 = vmul.f32 %v854_v10, %v124_v43  ;;  %v224_v15 = vmul.f32 %v855_v18, %v124_v43 }
  0xd5   :  { %v130_v55 = vsel %vm129_vm2, %v127_v40, %v128_v46  ;;  %v131_v56 = vsel %vm129_vm2, %v128_v46, %v127_v40  ;;  %v1190_v57 = vsel %vm134_vm3, %v132_v41, %v133_v47  ;;  %v183_v0 = vsel %vm129_vm2, %v181_v50, %v182_v48 }
  0xd6   :  { %v137_v61 = vsel %vm95_vm4, %v1190_v57, %v131_v56  ;;  %v145_v62 = vmul.f32 %v848_v42, %v130_v55  ;;  %v152_v63 = vmul.f32 %v849_v45, %v130_v55  ;;  %v184_v1 = vsel %vm129_vm2, %v182_v48, %v181_v50  ;;  %v859_v48 = vld [vmem:[#allocation6 + $0xe] ss:$0 sm:$0xff]  ;;  %v861_v50 = vld [vmem:[#allocation6 + $0xf] ss:$0 sm:$0xff] }
  0xd7   :  { %v1201_v2 = vsel %vm134_vm3, %v185_v54, %v186_v49  ;;  %v144_v6 = vmul.f32 %v848_v42, %v137_v61  ;;  %v151_v7 = vmul.f32 %v849_v45, %v137_v61  ;;  %v197_v16 = vmul.f32 %v852_v58, %v183_v0 }
  0xd8   :  { %v171_v8 = vadd.f32 %v169_v52, %v145_v62  ;;  %v180_v9 = vadd.f32 %v178_v53, %v152_v63  ;;  %v189_v14 = vsel %vm95_vm4, %v1201_v2, %v184_v1  ;;  %v206_v17 = vmul.f32 %v853_v59, %v183_v0 }
  0xd9   :  { %v136_v25 = vsel %vm134_vm3, %v133_v47, %v132_v41  ;;  %v196_v31 = vmul.f32 %v852_v58, %v189_v14  ;;  %v205_v35 = vmul.f32 %v853_v59, %v189_v14  ;;  %v179_v36 = vadd.f32 %v177_v5, %v151_v7 }
  0xda   :  { %v199_v28 = vadd.f32 %v197_v16, %v171_v8  ;;  %v208_v30 = vadd.f32 %v206_v17, %v180_v9  ;;  %v170_v37 = vadd.f32 %v168_v4, %v144_v6  ;;  %v214_v40 = vmul.f32 %v854_v10, %v123_v33 }
  0xdb   :  { %v223_v42 = vmul.f32 %v855_v18, %v123_v33  ;;  %v251_v52 = vmul.f32 %v858_v39, %v1177_v44  ;;  %v264_v41 = vsel %vm98_vm5, %v130_v55, %v136_v25  ;;  %v207_v47 = vadd.f32 %v205_v35, %v179_v36 }
  0xdc   :  { %v217_v45 = vadd.f32 %v215_v19, %v199_v28  ;;  %v226_v46 = vadd.f32 %v224_v15, %v208_v30  ;;  %v198_v43 = vadd.f32 %v196_v31, %v170_v37  ;;  %v188_v53 = vsel %vm134_vm3, %v186_v49, %v185_v54  ;;  %v865_v49 = vld [vmem:[#allocation6 + $0x11] ss:$0 sm:$0xff] }
  0xdd   :  { %v260_v33 = vmul.f32 %v859_v48, %v1177_v44  ;;  %v250_v59 = vmul.f32 %v858_v39, %v1171_v34  ;;  %v225_v60 = vadd.f32 %v223_v42, %v207_v47  ;;  %v291_v61 = vmul.f32 %v862_v38, %v1154_v26 }
  0xde   :  { %v235_v56 = vadd.f32 %v233_v51, %v217_v45  ;;  %v244_v58 = vadd.f32 %v242_v12, %v226_v46  ;;  %v216_v62 = vadd.f32 %v214_v40, %v198_v43  ;;  %v271_v4 = vmul.f32 %v860_v13, %v264_v41 }
  0xdf   :  { %v280_v5 = vmul.f32 %v861_v50, %v264_v41  ;;  %v259_v55 = vmul.f32 %v859_v48, %v1171_v34  ;;  %v304_v6 = vsel %vm98_vm5, %v183_v0, %v188_v53  ;;  %v243_v51 = vadd.f32 %v241_v21, %v225_v60 }
  0xe0   :  { %v253_v63 = vadd.f32 %v251_v52, %v235_v56  ;;  %v262_v1 = vadd.f32 %v260_v33, %v244_v58  ;;  %v234_v54 = vadd.f32 %v232_v20, %v216_v62  ;;  %v299_v8 = vmul.f32 %v863_v3, %v1137_v22 }
  0xe1   :  { %v290_v9 = vmul.f32 %v862_v38, %v1137_v22  ;;  %v270_v26 = vmul.f32 %v860_v13, %v1190_v57  ;;  %v279_v10 = vmul.f32 %v861_v50, %v1190_v57  ;;  %v261_v12 = vadd.f32 %v259_v55, %v243_v51  ;;  %v864_v57 = vld [vmem:[#allocation6 + $0x8] ss:$0 sm:$0xff] }
  0xe2   :  { %v273_v7 = vadd.f32 %v271_v4, %v253_v63  ;;  %v282_v44 = vadd.f32 %v280_v5, %v262_v1  ;;  %v252_v14 = vadd.f32 %v250_v59, %v234_v54  ;;  %v320_v34 = vmul.f32 %v865_v49, %v304_v6 }
  0xe3   :  { %v281_v18 = vadd.f32 %v279_v10, %v261_v12  ;;  %v319_v20 = vmul.f32 %v865_v49, %v1201_v2  ;;  %v311_v3 = vmul.f32 %v864_v57, %v304_v6  ;;  %v310_v28 = vmul.f32 %v864_v57, %v1201_v2 }
  0xe4   :  { %v302_v16 = vadd.f32 %v300_v24, %v282_v44  ;;  %v293_v17 = vadd.f32 %v291_v61, %v273_v7  ;;  %v272_v0 = vadd.f32 %v270_v26, %v252_v14  ;;  %v364_v40 = vstv %s866_s20 }
  0xe5   :  { %v301_v21 = vadd.f32 %v299_v8, %v281_v18  ;;  %v342_v62 = vstv %s341_s21  ;;  %v1544_v1 = vmov 0 }
  0xe6   :  { %v322_v19 = vadd.f32 %v320_v34, %v302_v16  ;;  %v292_v25 = vadd.f32 %v290_v9, %v272_v0  ;;  %v313_v24 = vadd.f32 %v311_v3, %v293_v17  ;;  %v1545_v1 = vsel %vm1245_vm10, 4294967295, %v1544_v1 }
  0xe7   :  { %v321_v22 = vadd.f32 %v319_v20, %v301_v21  ;;  %1546 = vst [vmem:[#allocation20_spill] sm:$0xff] %v1545_v1 }
  0xe8   :  { %347 = vrot.lane.b32.xlu1 %v322_v19, %s1056_s17  ;;  %v312_v30 = vadd.f32 %v310_v28, %v292_v25 }
  0xe9   :  { %345 = vrot.lane.b32.xlu0 %v321_v22, %s1056_s17 }
  0xec   :  { %353 = vrot.lane.b32.xlu1 %v322_v19, %s1057_s18 }
  0xed   :  { %351 = vrot.lane.b32.xlu0 %v321_v22, %s1057_s18 }
  0xf0   :  { %359 = vrot.lane.b32.xlu1 %v322_v19, %s1058_s19 }
  0xf1   :  { %357 = vrot.lane.b32.xlu0 %v321_v22, %s1058_s19 }
  0xf4   :  { %325 = vrot.lane.b32.xlu1 %v313_v24, %s1056_s17 }
  0xf5   :  { %323 = vrot.lane.b32.xlu0 %v312_v30, %s1056_s17 }
  0xf8   :  { %331 = vrot.lane.b32.xlu1 %v313_v24, %s1057_s18 }
  0xf9   :  { %329 = vrot.lane.b32.xlu0 %v312_v30, %s1057_s18 }
  0xfc   :  { %337 = vrot.lane.b32.xlu1 %v313_v24, %s1058_s19 }
  0xfd   :  { %335 = vrot.lane.b32.xlu0 %v312_v30, %s1058_s19 }
 0x15a   :  { %v348_v15 = vpop.permute.xlu1 %347 }
 0x15b   :  { %v346_v31 = vpop.permute.xlu0 %345  ;;  %v350_v36 = vadd.f32 %v348_v15, %v322_v19  ;;  %v886_v15 = vld [vmem:[#allocation9 + $0xd] ss:$0 sm:$0xff] }
 0x15c   :  { %v349_v39 = vadd.f32 %v346_v31, %v321_v22 }
 0x15e   :  { %v354_v35 = vpop.permute.xlu1 %353 }
 0x15f   :  { %v356_v37 = vadd.f32 %v354_v35, %v350_v36  ;;  %v352_v2 = vpop.permute.xlu0 %351  ;;  %v887_v35 = vld [vmem:[#allocation9 + $0x16] ss:$0 sm:$0xff]  ;;  %v888_v36 = vld [vmem:[#allocation9 + $0x1f] ss:$0 sm:$0xff] }
 0x160   :  { %v355_v46 = vadd.f32 %v352_v2, %v349_v39  ;;  %v874_v2 = vld [vmem:[#allocation9 + $0xa] ss:$0 sm:$0xff]  ;;  %v898_v39 = vld [vmem:[#allocation9 + $0x10] ss:$0 sm:$0xff] }
 0x162   :  { %v360_v42 = vpop.permute.xlu1 %359 }
 0x163   :  { %v362_v45 = vadd.f32 %v360_v42, %v356_v37  ;;  %v358_v48 = vpop.permute.xlu0 %357  ;;  %v1280_v37 = vld [vmem:[#allocation9 + $0x4] ss:$0 sm:$0xff] }
 0x164   :  { %v361_v13 = vadd.f32 %v358_v48, %v355_v46  ;;  %1549 = vst [vmem:[#allocation23_spill] sm:$0xff] %v1280_v37 }
 0x165   :  { %v366_v38 = vadd.f32 %v364_v40, %v362_v45  ;;  %v875_v45 = vld [vmem:[#allocation9 + $0x13] ss:$0 sm:$0xff] }
 0x166   :  { %v365_v50 = vadd.f32 %v364_v40, %v361_v13  ;;  %v326_v52 = vpop.permute.xlu1 %325 }
 0x167   :  { %372 = vrot.lane.b32.xlu1 %v366_v38, %s1058_s19  ;;  %v324_v41 = vpop.permute.xlu0 %323  ;;  %v328_v53 = vadd.f32 %v326_v52, %v313_v24  ;;  %v899_v38 = vld [vmem:[#allocation9 + $0x19] ss:$0 sm:$0xff] }
 0x168   :  { %370 = vrot.lane.b32.xlu0 %v365_v50, %s1058_s19  ;;  %v327_v33 = vadd.f32 %v324_v41, %v312_v30 }
 0x16a   :  { %v332_v47 = vpop.permute.xlu1 %331 }
 0x16b   :  { %v330_v43 = vpop.permute.xlu0 %329  ;;  %v334_v58 = vadd.f32 %v332_v47, %v328_v53  ;;  %v1299_v53 = vld [vmem:[#allocation9 + $0x22] ss:$0 sm:$0xff] }
 0x16c   :  { %v333_v61 = vadd.f32 %v330_v43, %v327_v33  ;;  %v876_v43 = vld [vmem:[#allocation9 + $0x1c] ss:$0 sm:$0xff]  ;;  %1550 = vst [vmem:[#allocation24_spill] sm:$0xff] %v1299_v53 }
 0x16e   :  { %v338_v56 = vpop.permute.xlu1 %337 }
 0x16f   :  { %v340_v59 = vadd.f32 %v338_v56, %v334_v58  ;;  %v336_v60 = vpop.permute.xlu0 %335 }
 0x170   :  { %v339_v63 = vadd.f32 %v336_v60, %v333_v61  ;;  %v873_v61 = vld [vmem:[#allocation9 + $0x1] ss:$0 sm:$0xff] }
 0x171   :  { %v344_v4 = vadd.f32 %v342_v62, %v340_v59 }
 0x172   :  { %v343_v6 = vadd.f32 %v342_v62, %v339_v63 }
 0x1d9   :  { %v373_v5 = vpop.permute.xlu1 %372 }
 0x1da   :  { %v375_v55 = vsel %vm1245_vm10, %v373_v5, %v344_v4  ;;  %v371_v54 = vpop.permute.xlu0 %370 }
 0x1db   :  { %v377_v49 = vsel %vm368_vm9, %v375_v55, 0.0  ;;  %v374_v7 = vsel %vm1245_vm10, %v371_v54, %v343_v6  ;;  %v1321_v55 = vld [vmem:[#allocation9 + $0x3] ss:$0 sm:$0xff]  ;;  %v882_v6 = vld [vmem:[#allocation9 + $0xc] ss:$0 sm:$0xff] }
 0x1dc   :  { %v382_v51 = vmul.f32 1.442695, %v377_v49  ;;  %v376_v44 = vsel %vm368_vm9, %v374_v7, 0.0  ;;  %vm379_vm11 = vcmp.gt.f32.partialorder %v377_v49, 0.0  ;;  %1551 = vst [vmem:[#allocation25_spill] sm:$0xff] %v1321_v55 }
 0x1dd   :  { %v380_v8 = vmul.f32 1.442695, %v376_v44  ;;  %vm378_vm12 = vcmp.gt.f32.partialorder %v376_v44, 0.0 }
 0x1de   :  { %925 = vpow2.f32 %v382_v51 }
 0x1df   :  { %927 = vpow2.f32 %v380_v8  ;;  %v883_v8 = vld [vmem:[#allocation9 + $0x15] ss:$0 sm:$0xff] }
 0x1eb   :  { %v926_v9 = vpop.eup %925 }
 0x1ec   :  { %v868_v26 = vadd.f32 -1.0, %v926_v9  ;;  %v928_v10 = vpop.eup %927  ;;  %v884_v9 = vld [vmem:[#allocation9 + $0x1e] ss:$0 sm:$0xff] }
 0x1ed   :  { %v867_v14 = vadd.f32 -1.0, %v928_v10 }
 0x1ee   :  { %v387_v12 = vmul.f32 1.6732632, %v868_v26 }
 0x1ef   :  { %v386_v17 = vmul.f32 1.6732632, %v867_v14 }
 0x1f0   :  { %v389_v16 = vsel %vm379_vm11, %v377_v49, %v387_v12 }
 0x1f1   :  { %v391_v34 = vmul.f32 1.050701, %v389_v16  ;;  %v388_v18 = vsel %vm378_vm12, %v376_v44, %v386_v17  ;;  %v1338_v16 = vld [vmem:[#allocation9 + $0x5] ss:$0 sm:$0xff] }
 0x1f2   :  { %v1254_v0 = vmul.f32 1.050701, %v388_v18  ;;  %1552 = vst [vmem:[#allocation26_spill] sm:$0xff] %v1338_v16 }
 0x1f3   :  { %394 = vrot.lane.b32.xlu1 %v391_v34, %s1055_s16  ;;  %v443_v19 = vrot.slane %v391_v34, 7  ;;  %v447_v21 = vrot.slane %v391_v34, 1  ;;  %v1282_v42 = vmul.f32 %v886_v15, %v391_v34  ;;  %v1284_v46 = vmul.f32 %v887_v35, %v391_v34 }
 0x1f4   :  { %1547 = vst [vmem:[#allocation21_spill] sm:$0xff] %v1254_v0  ;;  %392 = vrot.lane.b32.xlu0 %v1254_v0, %s1055_s16  ;;  %v442_v20 = vrot.slane %v1254_v0, 7  ;;  %v446_v25 = vrot.slane %v1254_v0, 1  ;;  %v1286_v48 = vmul.f32 %v888_v36, %v391_v34  ;;  %v1289_v13 = vmul.f32 %v1280_v37, %v391_v34 }
 0x1f5   :  { %v1294_v41 = vmul.f32 %v886_v15, %v1254_v0  ;;  %v1297_v47 = vmul.f32 %v887_v35, %v1254_v0  ;;  %v1302_v56 = vmul.f32 %v888_v36, %v1254_v0 }
 0x1f6   :  { %v444_v22 = vsel %vm129_vm2, %v442_v20, %v443_v19  ;;  %v449_v57 = vsel %vm134_vm3, %v447_v21, %v446_v25  ;;  %v445_v3 = vsel %vm129_vm2, %v443_v19, %v442_v20  ;;  %v1269_v24 = vsel %vm134_vm3, %v446_v25, %v447_v21  ;;  %v891_v20 = vld [vmem:[#allocation9 + $0x17] ss:$0 sm:$0xff] }
 0x1f7   :  { %398 = vrot.lane.b32.xlu1 %v391_v34, %s1054_s3  ;;  %v1273_v28 = vsel %vm98_vm5, %v444_v22, %v449_v57  ;;  %v450_v30 = vsel %vm95_vm4, %v1269_v24, %v445_v3  ;;  %v1291_v52 = vmul.f32 %v874_v2, %v444_v22  ;;  %v1310_v60 = vmul.f32 %v898_v39, %v1269_v24  ;;  %v890_v34 = vld [vmem:[#allocation9 + $0xe] ss:$0 sm:$0xff] }
 0x1f8   :  { %1548 = vst [vmem:[#allocation22_spill] sm:$0xff] %v1273_v28  ;;  %396 = vrot.lane.b32.xlu0 %v1254_v0, %s1054_s3  ;;  %v1307_v33 = vmul.f32 %v898_v39, %v1273_v28  ;;  %v466_v59 = vmul.f32 %v874_v2, %v450_v30  ;;  %v1314_v63 = vmul.f32 %v875_v45, %v444_v22 }
 0x1f9   :  { %v1317_v4 = vmul.f32 %v899_v38, %v1273_v28  ;;  %v1319_v5 = vmul.f32 %v875_v45, %v450_v30  ;;  %v1324_v51 = vmul.f32 %v899_v38, %v1269_v24  ;;  %v1326_v54 = vmul.f32 %v876_v43, %v444_v22 }
 0x1fa   :  { %v1330_v7 = vmul.f32 %v1299_v53, %v1273_v28  ;;  %v1332_v44 = vmul.f32 %v876_v43, %v450_v30  ;;  %v1334_v12 = vmul.f32 %v873_v61, %v444_v22  ;;  %v1336_v14 = vmul.f32 %v873_v61, %v450_v30  ;;  %v892_v30 = vld [vmem:[#allocation9 + $0x20] ss:$0 sm:$0xff]  ;;  %v872_v28 = vld [vmem:[#allocation9 + $0x1b] ss:$0 sm:$0xff] }
 0x1fb   :  { %v869_v53 = vld [vmem:[#allocation9] ss:$0 sm:$0xff] }
 0x265   :  { %v395_v31 = vpop.permute.xlu1 %394 }
 0x266   :  { %v393_v40 = vpop.permute.xlu0 %392 }
 0x269   :  { %v399_v50 = vpop.permute.xlu1 %398 }
 0x26a   :  { %v401_v58 = vsel %vm1159_vm6, %v399_v50, %v395_v31  ;;  %v403_v62 = vsel %vm1163_vm7, %v395_v31, %v399_v50  ;;  %v397_v49 = vpop.permute.xlu0 %396 }
 0x26b   :  { %v405_v26 = vrot.slane %v401_v58, 7  ;;  %v409_v10 = vrot.slane %v401_v58, 1  ;;  %v489_v17 = vrot.slane %v403_v62, 7  ;;  %v493_v18 = vrot.slane %v403_v62, 1 }
 0x26c   :  { %v1342_v19 = vsel %vm1159_vm6, %v397_v49, %v393_v40  ;;  %v1346_v21 = vsel %vm1163_vm7, %v393_v40, %v397_v49  ;;  %v1349_v25 = vmul.f32 %v1321_v55, %v401_v58  ;;  %v549_v15 = vmul.f32 %v882_v6, %v401_v58 }
 0x26d   :  { %1553 = vst [vmem:[#allocation27_spill] sm:$0xff] %v1342_v19  ;;  %1554 = vst [vmem:[#allocation28_spill] sm:$0xff] %v1346_v21  ;;  %v404_v22 = vrot.slane %v1342_v19, 7  ;;  %v408_v57 = vrot.slane %v1342_v19, 1  ;;  %v488_v3 = vrot.slane %v1346_v21, 7  ;;  %v558_v31 = vmul.f32 %v883_v8, %v401_v58 }
 0x26e   :  { %v1354_v29 = vmul.f32 %v884_v9, %v401_v58  ;;  %v492_v35 = vrot.slane %v1346_v21, 1  ;;  %v1358_v36 = vmul.f32 %v1338_v16, %v403_v62  ;;  %v621_v45 = vmul.f32 %v890_v34, %v403_v62  ;;  %v878_v58 = vld [vmem:[#allocation9 + $0xb] ss:$0 sm:$0xff] }
 0x26f   :  { %v1362_v2 = vsel %vm129_vm2, %v404_v22, %v405_v26  ;;  %v407_v39 = vsel %vm129_vm2, %v405_v26, %v404_v22  ;;  %v1368_v40 = vsel %vm134_vm3, %v408_v57, %v409_v10  ;;  %v411_v38 = vsel %vm134_vm3, %v409_v10, %v408_v57 }
 0x270   :  { %1555 = vst [vmem:[#allocation29_spill] sm:$0xff] %v1358_v36  ;;  %v1375_v50 = vsel %vm95_vm4, %v1368_v40, %v407_v39  ;;  %v1379_v43 = vsel %vm129_vm2, %v488_v3, %v489_v17  ;;  %v1381_v61 = vmul.f32 %v891_v20, %v403_v62  ;;  %v1383_v49 = vmul.f32 %v892_v30, %v403_v62 }
 0x271   :  { %v491_v26 = vsel %vm129_vm2, %v489_v17, %v488_v3  ;;  %v427_v22 = vmul.f32 %v870_v32, %v1362_v2  ;;  %v548_v10 = vmul.f32 %v882_v6, %v1342_v19  ;;  %v557_v57 = vmul.f32 %v883_v8, %v1342_v19  ;;  %v894_v3 = vld [vmem:[#allocation9 + $0xf] ss:$0 sm:$0xff] }
 0x272   :  { %v495_v39 = vsel %vm134_vm3, %v493_v18, %v492_v35  ;;  %v426_v1 = vmul.f32 %v870_v32, %v1375_v50  ;;  %v513_v62 = vmul.f32 %v878_v58, %v1379_v43  ;;  %v1398_v17 = vsel %vm98_vm5, %v1362_v2, %v411_v38 }
 0x273   :  { %v469_v16 = vadd.f32 %v1291_v52, %v427_v22  ;;  %v1402_v6 = vsel %vm134_vm3, %v492_v35, %v493_v18  ;;  %v1405_v8 = vmul.f32 %v884_v9, %v1342_v19  ;;  %v620_v32 = vmul.f32 %v890_v34, %v1346_v21  ;;  %v879_v22 = vld [vmem:[#allocation9 + $0x14] ss:$0 sm:$0xff]  ;;  %v902_v18 = vld [vmem:[#allocation9 + $0x11] ss:$0 sm:$0xff] }
 0x274   :  { %v468_v37 = vadd.f32 %v466_v59, %v426_v1  ;;  %v1411_v52 = vsel %vm95_vm4, %v1402_v6, %v491_v26  ;;  %v1416_v38 = vsel %vm98_vm5, %v1379_v43, %v495_v39  ;;  %v434_v9 = vmul.f32 %v871_v27, %v1362_v2 }
 0x275   :  { %v515_v0 = vadd.f32 %v513_v62, %v469_v16  ;;  %v512_v35 = vmul.f32 %v878_v58, %v1411_v52  ;;  %v629_v1 = vmul.f32 %v891_v20, %v1346_v21  ;;  %v1422_v59 = vmul.f32 %v892_v30, %v1346_v21  ;;  %v880_v62 = vld [vmem:[#allocation9 + $0x1d] ss:$0 sm:$0xff] }
 0x276   :  { %v659_v11 = vmul.f32 %v894_v3, %v1398_v17  ;;  %v433_v16 = vmul.f32 %v871_v27, %v1375_v50  ;;  %v478_v23 = vadd.f32 %v1314_v63, %v434_v9  ;;  %v522_v39 = vmul.f32 %v879_v22, %v1379_v43 }
 0x277   :  { %v551_v34 = vadd.f32 %v549_v15, %v515_v0  ;;  %v514_v26 = vadd.f32 %v512_v35, %v468_v37  ;;  %v735_v58 = vmul.f32 %v902_v18, %v1416_v38  ;;  %v521_v20 = vmul.f32 %v879_v22, %v1411_v52  ;;  %v895_v37 = vld [vmem:[#allocation9 + $0x18] ss:$0 sm:$0xff] }
 0x278   :  { %v477_v36 = vadd.f32 %v1319_v5, %v433_v16  ;;  %v441_v30 = vmul.f32 %v872_v28, %v1362_v2  ;;  %v658_v27 = vmul.f32 %v894_v3, %v1368_v40  ;;  %v524_v0 = vadd.f32 %v522_v39, %v478_v23  ;;  %v877_v23 = vld [vmem:[#allocation9 + $0x2] ss:$0 sm:$0xff] }
 0x279   :  { %v587_v21 = vadd.f32 %v1282_v42, %v551_v34  ;;  %v550_v55 = vadd.f32 %v548_v10, %v514_v26  ;;  %v734_v63 = vmul.f32 %v902_v18, %v1402_v6  ;;  %v531_v9 = vmul.f32 %v880_v62, %v1379_v43 }
 0x27a   :  { %v523_v15 = vadd.f32 %v521_v20, %v477_v36  ;;  %v487_v35 = vadd.f32 %v1326_v54, %v441_v30  ;;  %v560_v22 = vadd.f32 %v558_v31, %v524_v0  ;;  %v440_v16 = vmul.f32 %v872_v28, %v1375_v50 }
 0x27b   :  { %v623_v19 = vadd.f32 %v621_v45, %v587_v21  ;;  %v586_v5 = vadd.f32 %v1294_v41, %v550_v55  ;;  %v668_v42 = vmul.f32 %v895_v37, %v1398_v17  ;;  %v530_v34 = vmul.f32 %v880_v62, %v1411_v52 }
 0x27c   :  { %v559_v10 = vadd.f32 %v557_v57, %v523_v15  ;;  %v533_v3 = vadd.f32 %v531_v9, %v487_v35  ;;  %v596_v36 = vadd.f32 %v1284_v46, %v560_v22  ;;  %v486_v54 = vadd.f32 %v1332_v44, %v440_v16  ;;  %v893_v35 = vld [vmem:[#allocation9 + $0x6] ss:$0 sm:$0xff]  ;;  %v897_v16 = vld [vmem:[#allocation9 + $0x7] ss:$0 sm:$0xff] }
 0x27d   :  { %v661_v26 = vadd.f32 %v659_v11, %v623_v19  ;;  %v622_v18 = vadd.f32 %v620_v32, %v586_v5  ;;  %v667_v41 = vmul.f32 %v895_v37, %v1368_v40  ;;  %v420_v55 = vmul.f32 %v869_v53, %v1362_v2  ;;  %v896_v19 = vld [vmem:[#allocation9 + $0x21] ss:$0 sm:$0xff]  ;;  %v903_v11 = vld [vmem:[#allocation9 + $0x1a] ss:$0 sm:$0xff] }
 0x27e   :  { %v595_v21 = vadd.f32 %v1297_v47, %v559_v10  ;;  %v569_v28 = vadd.f32 %v1354_v29, %v533_v3  ;;  %v632_v57 = vadd.f32 %v1381_v61, %v596_v36  ;;  %v532_v32 = vadd.f32 %v530_v34, %v486_v54  ;;  %v1556_v22 = vld [vmem:[#allocation24_spill] sm:$0xff]  ;;  %v1558_v10 = vld [vmem:[#allocation25_spill] sm:$0xff] }
 0x27f   :  { %v699_v31 = vadd.f32 %v1307_v33, %v661_v26  ;;  %v660_v45 = vadd.f32 %v658_v27, %v622_v18  ;;  %v460_v39 = vadd.f32 %v1334_v12, %v420_v55  ;;  %v504_v47 = vmul.f32 %v877_v23, %v1379_v43  ;;  %v901_v36 = vld [vmem:[#allocation9 + $0x8] ss:$0 sm:$0xff]  ;;  %v1562_v55 = vld [vmem:[#allocation23_spill] sm:$0xff] }
 0x280   :  { %v631_v46 = vadd.f32 %v629_v1, %v595_v21  ;;  %v605_v44 = vadd.f32 %v1286_v48, %v569_v28  ;;  %v670_v2 = vadd.f32 %v668_v42, %v632_v57  ;;  %v568_v33 = vadd.f32 %v1405_v8, %v532_v32  ;;  %v1557_v42 = vld [vmem:[#allocation27_spill] sm:$0xff]  ;;  %v1561_v28 = vld [vmem:[#allocation21_spill] sm:$0xff]  ;;  %v1563_v57 = vld [vmem:[#allocation28_spill] sm:$0xff] }
 0x281   :  { %v1452_v62 = vadd.f32 %v735_v58, %v699_v31  ;;  %v698_v29 = vadd.f32 %v1310_v60, %v660_v45  ;;  %v677_v30 = vmul.f32 %v896_v19, %v1398_v17  ;;  %v506_v27 = vadd.f32 %v504_v47, %v460_v39  ;;  %v904_v58 = vld [vmem:[#allocation9 + $0x23] ss:$0 sm:$0xff] }
 0x282   :  { %v669_v20 = vadd.f32 %v667_v41, %v631_v46  ;;  %v641_v61 = vadd.f32 %v1383_v49, %v605_v44  ;;  %v708_v12 = vadd.f32 %v1317_v4, %v670_v2  ;;  %v744_v43 = vmul.f32 %v903_v11, %v1416_v38 }
 0x283   :  { %768 = vrot.lane.b32.xlu1 %v1452_v62, %s1056_s17  ;;  %v1460_v48 = vadd.f32 %v734_v63, %v698_v29  ;;  %v604_v60 = vadd.f32 %v1302_v56, %v568_v33  ;;  %v542_v49 = vadd.f32 %v1349_v25, %v506_v27  ;;  %v419_v0 = vmul.f32 %v869_v53, %v1375_v50 }
 0x284   :  { %v707_v1 = vadd.f32 %v1324_v51, %v669_v20  ;;  %v679_v8 = vadd.f32 %v677_v30, %v641_v61  ;;  %v746_v37 = vadd.f32 %v744_v43, %v708_v12  ;;  %v743_v63 = vmul.f32 %v903_v11, %v1402_v6 }
 0x285   :  { %766 = vrot.lane.b32.xlu0 %v1460_v48, %s1056_s17  ;;  %v640_v4 = vadd.f32 %v1422_v59, %v604_v60  ;;  %v676_v15 = vmul.f32 %v896_v19, %v1368_v40  ;;  %v578_v51 = vadd.f32 %v1289_v13, %v542_v49  ;;  %v459_v9 = vadd.f32 %v1336_v14, %v419_v0 }
 0x286   :  { %v717_v56 = vadd.f32 %v1330_v7, %v679_v8  ;;  %v503_v25 = vmul.f32 %v877_v23, %v1411_v52  ;;  %v745_v53 = vadd.f32 %v743_v63, %v707_v1  ;;  %v753_v50 = vmul.f32 %v904_v58, %v1416_v38  ;;  %v1559_v7 = vld [vmem:[#allocation29_spill] sm:$0xff]  ;;  %v1560_v23 = vld [vmem:[#allocation22_spill] sm:$0xff] }
 0x287   :  { %778 = vrot.lane.b32.xlu1 %v746_v37, %s1056_s17  ;;  %v678_v5 = vadd.f32 %v676_v15, %v640_v4  ;;  %v714_v59 = vmul.f32 %v1556_v22, %v1269_v24  ;;  %v539_v3 = vmul.f32 %v1558_v10, %v1557_v42  ;;  %v614_v34 = vadd.f32 %v1559_v7, %v578_v51 }
 0x288   :  { %v650_v13 = vmul.f32 %v893_v35, %v1398_v17  ;;  %v505_v14 = vadd.f32 %v503_v25, %v459_v9  ;;  %v755_v52 = vadd.f32 %v753_v50, %v717_v56  ;;  %v752_v18 = vmul.f32 %v904_v58, %v1402_v6  ;;  %v1564_v17 = vld [vmem:[#allocation26_spill] sm:$0xff] }
 0x289   :  { %776 = vrot.lane.b32.xlu0 %v745_v53, %s1056_s17  ;;  %v716_v26 = vadd.f32 %v714_v59, %v678_v5  ;;  %v688_v21 = vmul.f32 %v897_v16, %v1560_v23  ;;  %v575_v31 = vmul.f32 %v1562_v55, %v1561_v28  ;;  %v611_v19 = vmul.f32 %v1564_v17, %v1563_v57  ;;  %v1565_v5 = vld [vmem:[#allocation19_spill] sm:$0xff] }
 0x28a   :  { %v652_v54 = vadd.f32 %v650_v13, %v614_v34  ;;  %v541_v41 = vadd.f32 %v539_v3, %v505_v14  ;;  %v726_v11 = vmul.f32 %v901_v36, %v1416_v38  ;;  %v649_v47 = vmul.f32 %v893_v35, %v1368_v40  ;;  %v930_v28 = vld [vmem:[#allocation2] sm:$0xff] }
 0x28b   :  { %788 = vrot.lane.b32.xlu1 %v755_v52, %s1056_s17  ;;  %v754_v45 = vadd.f32 %v752_v18, %v716_v26  ;;  %v687_v2 = vmul.f32 %v897_v16, %v1269_v24  ;;  %v725_v20 = vmul.f32 %v901_v36, %v1402_v6  ;;  %v773_v38 = vstv %s905_s22 }
 0x28c   :  { %v690_v32 = vadd.f32 %v688_v21, %v652_v54  ;;  %v577_v46 = vadd.f32 %v575_v31, %v541_v41  ;;  %v783_v60 = vstv %s906_s25  ;;  %v793_v0 = vstv %s907_s26  ;;  %v929_v21 = vld [vmem:[#allocation2 + $0x8] sm:$0xff] }
 0x28d   :  { %786 = vrot.lane.b32.xlu0 %v754_v45, %s1056_s17  ;;  %vm802_vm13 = vcmp.ge.s32.totalorder %v1565_v5, 64  ;;  %vm803_vm14 = vcmp.lt.s32.totalorder %v1565_v5, 96  ;;  %vm811_vm0 = vcmp.ge.s32.totalorder %v1565_v5, 96 }
 0x28e   :  { %v728_v44 = vadd.f32 %v726_v11, %v690_v32  ;;  %v613_v39 = vadd.f32 %v611_v19, %v577_v46  ;;  %vm804_vm15 = vmand %vm802_vm13, %vm803_vm14 }
 0x290   :  { %758 = vrot.lane.b32.xlu1 %v728_v44, %s1056_s17  ;;  %v651_v29 = vadd.f32 %v649_v47, %v613_v39 }
 0x292   :  { %v689_v33 = vadd.f32 %v687_v2, %v651_v29 }
 0x294   :  { %v727_v61 = vadd.f32 %v725_v20, %v689_v33 }
 0x296   :  { %756 = vrot.lane.b32.xlu0 %v727_v61, %s1056_s17 }
 0x2f5   :  { %v769_v30 = vpop.permute.xlu1 %768 }
 0x2f6   :  { %v771_v27 = vadd.f32 %v769_v30, %v1452_v62 }
 0x2f7   :  { %v767_v12 = vpop.permute.xlu0 %766 }
 0x2f8   :  { %v775_v40 = vadd.f32 %v773_v38, %v771_v27  ;;  %v770_v43 = vadd.f32 %v767_v12, %v1460_v48 }
 0x2f9   :  { %v779_v1 = vpop.permute.xlu1 %778 }
 0x2fa   :  { %v774_v24 = vadd.f32 %v773_v38, %v770_v43  ;;  %v781_v8 = vadd.f32 %v779_v1, %v746_v37  ;;  %798 = vrot.lane.b32.xlu1 %v775_v40, %s1058_s19 }
 0x2fb   :  { %v777_v6 = vpop.permute.xlu0 %776 }
 0x2fc   :  { %v785_v58 = vadd.f32 %v783_v60, %v781_v8  ;;  %v780_v49 = vadd.f32 %v777_v6, %v745_v53  ;;  %796 = vrot.lane.b32.xlu0 %v774_v24, %s1058_s19  ;;  %v763_v53 = vstv %s762_s27 }
 0x2fd   :  { %v789_v63 = vpop.permute.xlu1 %788 }
 0x2fe   :  { %v784_v4 = vadd.f32 %v783_v60, %v780_v49  ;;  %v791_v15 = vadd.f32 %v789_v63, %v755_v52  ;;  %807 = vrot.lane.b32.xlu1 %v785_v58, %s1057_s18 }
 0x2ff   :  { %v787_v62 = vpop.permute.xlu0 %786 }
 0x300   :  { %v795_v35 = vadd.f32 %v793_v0, %v791_v15  ;;  %v790_v48 = vadd.f32 %v787_v62, %v754_v45  ;;  %805 = vrot.lane.b32.xlu0 %v784_v4, %s1057_s18 }
 0x302   :  { %v794_v56 = vadd.f32 %v793_v0, %v790_v48  ;;  %816 = vrot.lane.b32.xlu1 %v795_v35, %s1056_s17  ;;  %v759_v37 = vpop.permute.xlu1 %758 }
 0x303   :  { %v761_v25 = vadd.f32 %v759_v37, %v728_v44 }
 0x304   :  { %814 = vrot.lane.b32.xlu0 %v794_v56, %s1056_s17 }
 0x305   :  { %v765_v16 = vadd.f32 %v763_v53, %v761_v25 }
 0x308   :  { %v757_v51 = vpop.permute.xlu0 %756 }
 0x309   :  { %v760_v22 = vadd.f32 %v757_v51, %v727_v61 }
 0x30b   :  { %v764_v10 = vadd.f32 %v763_v53, %v760_v22 }
 0x36c   :  { %v799_v9 = vpop.permute.xlu1 %798 }
 0x36d   :  { %v801_v7 = vsel %vm1245_vm10, %v799_v9, %v765_v16 }
 0x36e   :  { %v797_v50 = vpop.permute.xlu0 %796 }
 0x36f   :  { %v800_v14 = vsel %vm1245_vm10, %v797_v50, %v764_v10 }
 0x370   :  { %v808_v59 = vpop.permute.xlu1 %807 }
 0x371   :  { %v810_v34 = vsel %vm804_vm15, %v808_v59, %v801_v7 }
 0x372   :  { %v806_v42 = vpop.permute.xlu0 %805 }
 0x373   :  { %v809_v26 = vsel %vm804_vm15, %v806_v42, %v800_v14 }
 0x374   :  { %v817_v13 = vpop.permute.xlu1 %816 }
 0x375   :  { %v819_v52 = vsel %vm811_vm0, %v817_v13, %v810_v34 }
 0x376   :  { %v821_v18 = vmul.f32 0.25, %v819_v52  ;;  %v815_v36 = vpop.permute.xlu0 %814 }
 0x377   :  { %v818_v54 = vsel %vm811_vm0, %v815_v36, %v809_v26 }
 0x378   :  { %v820_v23 = vmul.f32 0.25, %v818_v54  ;;  %v823_v41 = vadd.f32 %v929_v21, %v821_v18 }
 0x37a   :  { %v822_v55 = vadd.f32 %v930_v28, %v820_v23  ;;  %825 = vst [vmem:[#allocation12 + $0x8] sm:$0xff] %v823_v41 }
 0x37c   :  { %824 = vst [vmem:[#allocation12] sm:$0xff] %v822_v55 }
 0x37d   :  { %1026 = shalt.err (!%p1023_p1)
}
 0x37e   :  { %837 = dma.vmem_to_hbm [thread:$0]  %s832_s29, 256, %s1526_s5, [#allocation4], %s1049_s23, %s1049_s23, %s1050_s24  }
 0x37f   :  { %1045 = dma.done.wait [#allocation4], 256  }
 0x380   :  { %1046 = vsyncadd [#allocation4], 4294967040 }
 0x381   :  { %841 = vsyncpa [#allocation3], 1 }
 0x382   :  { %842 = vsyncpa [#allocation7], 1 }
 0x383   :  { %843 = vsyncpa [#allocation4], 1 }
 0x384   :  { %844 = vsyncpa [#allocation5], 1 }
 0x385   :  { %845 = vsyncpa [#allocation11], 1 }

</bundles_post_ra>
